<compile_context>
chip_gen: v7x
topology: tpu7x:2x2x1
jax: 0.10.0
libtpu: 0.0.40
codegen_flags: <defaults>
</compile_context>

<pallas_src>
import jax
import jax.numpy as jnp
from jax.experimental import pallas as pl
from jax.experimental.pallas import tpu as pltpu

EPS = 1e-5
GROUPS = 32


# ---------------------------------------------------------------------------
# in-kernel helpers
# ---------------------------------------------------------------------------
def _group_norm_swish(h2d, gamma, beta, mask, mask_t):
    """h2d: (HW, C) f32; gamma/beta: (1, C); mask: (C, G); mask_t: (G, C).

    Stats are a single f32 pass (E[x^2]-E[x]^2); fine for DDPM activations
    with eps=1e-5 (note: cancellation-prone for badly centered inputs).
    """
    HW, C = h2d.shape
    G = mask.shape[1]
    n = float(HW * (C // G))
    s = jnp.sum(h2d, axis=0, keepdims=True)                        # (1, C)
    ss = jnp.sum(h2d * h2d, axis=0, keepdims=True)                 # (1, C)
    sg = jnp.dot(s, mask, preferred_element_type=jnp.float32)      # (1, G)
    ssg = jnp.dot(ss, mask, preferred_element_type=jnp.float32)    # (1, G)
    mean_g = sg / n
    var_g = ssg / n - mean_g * mean_g
    inv_g = jax.lax.rsqrt(var_g + EPS)
    mean_c = jnp.dot(mean_g, mask_t, preferred_element_type=jnp.float32)
    inv_c = jnp.dot(inv_g, mask_t, preferred_element_type=jnp.float32)
    y = (h2d - mean_c) * inv_c * gamma + beta
    return y * jax.nn.sigmoid(y)                                   # Swish


def _conv3x3(h_f32, w_ref, acc0, mask_l, mask_r, HW, W):
    """3x3 / stride-1 / pad-1 conv as 9 accumulating bf16 MXU matmuls.

    h_f32:  (HW, C) f32 activation (flattened spatial, row-major y*W+x).
    w_ref:  (9, C, Cout) bf16 weight ref, tap index k = dy*3 + dx.
    acc0:   f32 accumulator init, broadcastable to (HW, Cout)
            (bias / temb projection / 1x1 shortcut folded in here).
    mask_l: (HW, 1) bf16, 0 where x == 0     (left border of the image row).
    mask_r: (HW, 1) bf16, 0 where x == W - 1 (right border).

    The tap for (dy, dx) is a flat shift of h by s = (dy-1)*W + (dx-1) rows
    (zero-padded at the ends, i.e. the y halo) with the wrapped columns
    zeroed by the precomputed masks (the x halo).  Shifts happen on values,
    so every store the kernel issues is a full, aligned block.
    (On v5e a single K=9C matmul would amortise MXU drains slightly better;
    the 9-dot form is chosen because it removes the im2col scratch / vst
    pressure that binds v6e/v7x and blows their VMEM budgets.)
    """
    C = h_f32.shape[1]
    h_bf = h_f32.astype(jnp.bfloat16)       # cast once; taps slice this value
    acc = acc0
    for dy in range(3):
        for dx in range(3):
            k = dy * 3 + dx
            s = (dy - 1) * W + (dx - 1)
            if s > 0:
                tap = jnp.concatenate(
                    [h_bf[s:, :], jnp.zeros((s, C), jnp.bfloat16)], axis=0)
            elif s < 0:
                tap = jnp.concatenate(
                    [jnp.zeros((-s, C), jnp.bfloat16), h_bf[:HW + s, :]],
                    axis=0)
            else:
                tap = h_bf
            if dx == 0:
                tap = tap * mask_l
            elif dx == 2:
                tap = tap * mask_r
            acc = acc + jnp.dot(tap, w_ref[k],
                                preferred_element_type=jnp.float32)
    return acc                                                      # (HW, Cout)


# ---------------------------------------------------------------------------
# the kernel (one batch element per grid step)
# ---------------------------------------------------------------------------
def _make_kernel(H, W):
    HW = H * W

    def kernel(x_ref, temb_ref,
               gn1_g, gn1_b, m1, m1t, w1, b1,
               lw, lb,
               gn2_g, gn2_b, m2, m2t, w2, b2,
               wsc, bsc, mask_l, mask_r,
               o_ref):
        x2d = x_ref[0].astype(jnp.float32)                  # (HW, Cin)
        ml = mask_l[...]
        mr = mask_r[...]

        # temb_proj: Swish -> Linear (per batch element, (1, Cout))
        t = temb_ref[0].astype(jnp.float32)                 # (1, Td)
        t = t * jax.nn.sigmoid(t)
        tproj = jnp.dot(t, lw[...],
                        preferred_element_type=jnp.float32) + lb[...]

        # block1: GroupNorm(32, Cin) -> Swish -> Conv3x3
        # (conv bias + temb projection folded into the accumulator init)
        h = _group_norm_swish(x2d, gn1_g[...], gn1_b[...], m1[...], m1t[...])
        h = _conv3x3(h, w1, b1[...] + tproj, ml, mr, HW, W)

        # block2: GroupNorm(32, Cout) -> Swish -> Dropout -> Conv3x3
        # TODO(synk): Dropout is identity (inference / eval semantics only).
        h = _group_norm_swish(h, gn2_g[...], gn2_b[...], m2[...], m2t[...])

        # shortcut: 1x1 conv (in_dim != out_dim config), folded into conv2's
        # accumulator init together with conv2's bias.
        # TODO(synk): the Cin == Cout / nn.Identity shortcut branch is not handled.
        sc = jnp.dot(x2d.astype(jnp.bfloat16), wsc[...],
                     preferred_element_type=jnp.float32) + bsc[...]
        h = _conv3x3(h, w2, b2[...] + sc, ml, mr, HW, W)

        # attn=False -> Identity.  bf16 writeback halves the output DMA.
        o_ref[0] = h.astype(o_ref.dtype)

    return kernel


# ---------------------------------------------------------------------------
# wrapper
# ---------------------------------------------------------------------------
PARAM_ORDER = ('gn1_g', 'gn1_b', 'm1', 'm1t', 'w1', 'b1', 'lw', 'lb',
               'gn2_g', 'gn2_b', 'm2', 'm2t', 'w2', 'b2', 'wsc', 'bsc',
               'mask_l', 'mask_r')


def _full_spec(p):
    nd = p.ndim
    return pl.BlockSpec(p.shape, lambda *args, _nd=nd: (0,) * _nd)


def _group_mask(C, groups):
    gs = C // groups
    c_of = jax.lax.broadcasted_iota(jnp.int32, (C, groups), 0) // gs
    g_of = jax.lax.broadcasted_iota(jnp.int32, (C, groups), 1)
    return (c_of == g_of).astype(jnp.float32)


def _vmem_limit_bytes():
    # Default scoped VMEM (16 MiB v5e / 32 MiB v6e,v7x) is unnecessarily
    # tight; raise it, leaving headroom below physical capacity
    # (128 MiB v5e/v6e, 64 MiB per-TC v7x).
    try:
        cap = int(pltpu.get_tpu_info().vmem_capacity_bytes)
    except Exception:
        cap = 64 << 20
    return int(min(100 << 20, (cap * 3) // 4))


@jax.jit
def resblock_forward(x_nhwc, temb, params):
    B, H, W, Cin = x_nhwc.shape
    Cout = params['b1'].shape[-1]
    Td = temb.shape[-1]
    HW = H * W

    m1 = _group_mask(Cin, GROUPS)
    m2 = _group_mask(Cout, GROUPS)
    x_of = jnp.arange(HW, dtype=jnp.int32) % W
    # NOTE: matmul operands are bf16 (best MXU path on all parts); for peak
    # efficiency prefer channel counts that are multiples of 128 (production
    # DDPM widths 128/256 already are; the toy 32/64 config just pads lanes).
    prep = dict(
        gn1_g=params['gn1_g'], gn1_b=params['gn1_b'], m1=m1, m1t=m1.T,
        w1=params['w1'].astype(jnp.bfloat16),          # (9, Cin, Cout)
        b1=params['b1'],
        lw=params['lw'], lb=params['lb'],
        gn2_g=params['gn2_g'], gn2_b=params['gn2_b'], m2=m2, m2t=m2.T,
        w2=params['w2'].astype(jnp.bfloat16),          # (9, Cout, Cout)
        b2=params['b2'],
        wsc=params['wsc'].astype(jnp.bfloat16), bsc=params['bsc'],
        mask_l=(x_of != 0).astype(jnp.bfloat16).reshape(HW, 1),
        mask_r=(x_of != W - 1).astype(jnp.bfloat16).reshape(HW, 1))
    plist = [prep[k] for k in PARAM_ORDER]

    x2d = x_nhwc.reshape(B, HW, Cin)                   # keep f32 input
    temb3 = temb.reshape(B, 1, Td)

    in_specs = ([pl.BlockSpec((1, HW, Cin), lambda b: (b, 0, 0)),
                 pl.BlockSpec((1, 1, Td), lambda b: (b, 0, 0))]
                + [_full_spec(p) for p in plist])

    flops = B * (2 * HW * 9 * Cin * Cout + 2 * HW * 9 * Cout * Cout
                 + 2 * HW * Cin * Cout + 2 * Td * Cout)
    transcendentals = B * (HW * Cin + HW * Cout + Td)
    param_bytes = sum(int(p.size) * p.dtype.itemsize for p in plist)
    bytes_accessed = (int(x2d.size) * 4 + int(temb.size) * 4
                      + B * HW * Cout * 2 + param_bytes)

    out = pl.pallas_call(
        _make_kernel(H, W),
        out_shape=jax.ShapeDtypeStruct((B, HW, Cout), jnp.bfloat16),
        grid=(B,),
        in_specs=in_specs,
        out_specs=pl.BlockSpec((1, HW, Cout), lambda b: (b, 0, 0)),
        compiler_params=pltpu.CompilerParams(
            dimension_semantics=("parallel",),
            vmem_limit_bytes=_vmem_limit_bytes()),
        cost_estimate=pl.CostEstimate(
            flops=int(flops),
            transcendentals=int(transcendentals),
            bytes_accessed=int(bytes_accessed)),
    )(x2d, temb3, *plist)
    return out.reshape(B, H, W, Cout)                  # bf16 NHWC


# ---------------------------------------------------------------------------
# pure-JAX reference (for correctness check)
# ---------------------------------------------------------------------------
def ref_forward(x, temb, params):
    def swish(v):
        return v * jax.nn.sigmoid(v)

    def gn(h, gamma, beta):
        B, H, W, C = h.shape
        hg = h.reshape(B, H, W, GROUPS, C // GROUPS)
        mean = hg.mean(axis=(1, 2, 4), keepdims=True)
        var = hg.var(axis=(1, 2, 4), keepdims=True)
        hg = (hg - mean) / jnp.sqrt(var + EPS)
        h = hg.reshape(B, H, W, C)
        return h * gamma.reshape(1, 1, 1, C) + beta.reshape(1, 1, 1, C)

    def conv3x3(h, w, b):
        w4 = w.reshape(3, 3, w.shape[1], w.shape[2])
        y = jax.lax.conv_general_dilated(
            h, w4, (1, 1), 'SAME',
            dimension_numbers=('NHWC', 'HWIO', 'NHWC'))
        return y + b.reshape(1, 1, 1, -1)

    h = conv3x3(swish(gn(x, params['gn1_g'], params['gn1_b'])),
                params['w1'], params['b1'])
    tp = swish(temb) @ params['lw'] + params['lb']            # (B, Cout)
    h = h + tp[:, None, None, :]
    h = conv3x3(swish(gn(h, params['gn2_g'], params['gn2_b'])),
                params['w2'], params['b2'])
    sc = (jnp.einsum('bhwi,io->bhwo', x, params['wsc'])
          + params['bsc'].reshape(1, 1, 1, -1))
    return h + sc


# ---------------------------------------------------------------------------
if __name__ == "__main__":
    B, H, W = 2, 8, 8
    Cin, Cout, Td = 32, 64, 32

    key = jax.random.PRNGKey(0)
    keys = jax.random.split(key, 8)
    x = jax.random.normal(keys[0], (B, H, W, Cin), jnp.float32)
    temb = jax.random.normal(keys[1], (B, Td), jnp.float32)

    def xavier_normal(k, shape, fan_in, fan_out):
        std = (2.0 / (fan_in + fan_out)) ** 0.5
        return std * jax.random.normal(k, shape, jnp.float32)

    # deterministic, synthetic parameters matching the module's shapes/init style
    u_bound = 1e-5 * (6.0 / (Cout * 9 + Cout * 9)) ** 0.5    # xavier_uniform, gain=1e-5
    params = {
        'gn1_g': jnp.ones((1, Cin), jnp.float32),
        'gn1_b': jnp.zeros((1, Cin), jnp.float32),
        'w1': xavier_normal(keys[2], (9, Cin, Cout), Cin * 9, Cout * 9),
        'b1': jnp.zeros((1, Cout), jnp.float32),
        'lw': xavier_normal(keys[3], (Td, Cout), Td, Cout),
        'lb': jnp.zeros((1, Cout), jnp.float32),
        'gn2_g': jnp.ones((1, Cout), jnp.float32),
        'gn2_b': jnp.zeros((1, Cout), jnp.float32),
        'w2': jax.random.uniform(keys[4], (9, Cout, Cout), jnp.float32,
                                 -u_bound, u_bound),
        'b2': jnp.zeros((1, Cout), jnp.float32),
        'wsc': xavier_normal(keys[5], (Cin, Cout), Cin, Cout),
        'bsc': jnp.zeros((1, Cout), jnp.float32),
    }

    out = resblock_forward(x, temb, params)
    out = jax.block_until_ready(out)
    assert out.shape == (B, H, W, Cout), out.shape
    assert out.dtype == jnp.bfloat16, out.dtype

    ref = ref_forward(x, temb, params)
    out_f32 = out.astype(jnp.float32)
    diff = jnp.abs(out_f32 - ref)
    tol = 3e-2 + 3e-2 * jnp.abs(ref)          # bf16 operands + bf16 output
    max_excess = float(jnp.max(diff - tol))
    max_err = float(jnp.max(diff))
    assert max_excess <= 0.0, f"max abs err {max_err}"
    print("KERNEL_OK")
</pallas_src>

<mosaic_0001>
module attributes {stable_mosaic.version = 11 : i64} {
  func.func @kernel(%arg0: i32, %arg1: memref<1x64x32xf32, #tpu.memory_space<vmem>>, %arg2: memref<1x1x32xf32, #tpu.memory_space<vmem>>, %arg3: memref<1x32xf32, #tpu.memory_space<vmem>>, %arg4: memref<1x32xf32, #tpu.memory_space<vmem>>, %arg5: memref<32x32xf32, #tpu.memory_space<vmem>>, %arg6: memref<32x32xf32, #tpu.memory_space<vmem>>, %arg7: memref<9x32x64xbf16, #tpu.memory_space<vmem>>, %arg8: memref<1x64xf32, #tpu.memory_space<vmem>>, %arg9: memref<32x64xf32, #tpu.memory_space<vmem>>, %arg10: memref<1x64xf32, #tpu.memory_space<vmem>>, %arg11: memref<1x64xf32, #tpu.memory_space<vmem>>, %arg12: memref<1x64xf32, #tpu.memory_space<vmem>>, %arg13: memref<64x32xf32, #tpu.memory_space<vmem>>, %arg14: memref<32x64xf32, #tpu.memory_space<vmem>>, %arg15: memref<9x64x64xbf16, #tpu.memory_space<vmem>>, %arg16: memref<1x64xf32, #tpu.memory_space<vmem>>, %arg17: memref<32x64xbf16, #tpu.memory_space<vmem>>, %arg18: memref<1x64xf32, #tpu.memory_space<vmem>>, %arg19: memref<64x1xbf16, #tpu.memory_space<vmem>>, %arg20: memref<64x1xbf16, #tpu.memory_space<vmem>>, %arg21: memref<1x64x64xbf16, #tpu.memory_space<vmem>>) attributes {dimension_semantics = [#tpu.dimension_semantics<parallel>], iteration_bounds = array<i64: 2>, scalar_prefetch = 0 : i64, scratch_operands = 0 : i64, tpu.core_type = #tpu.core_type<tc>, window_params = [{transform_indices = @transform_0, window_bounds = array<i64: 1, 64, 32>}, {transform_indices = @transform_1, window_bounds = array<i64: 1, 1, 32>}, {pipeline_mode = #tpu.pipeline_mode<synchronous>, transform_indices = @transform_2, window_bounds = array<i64: 1, 32>}, {pipeline_mode = #tpu.pipeline_mode<synchronous>, transform_indices = @transform_3, window_bounds = array<i64: 1, 32>}, {pipeline_mode = #tpu.pipeline_mode<synchronous>, transform_indices = @transform_4, window_bounds = array<i64: 32, 32>}, {pipeline_mode = #tpu.pipeline_mode<synchronous>, transform_indices = @transform_5, window_bounds = array<i64: 32, 32>}, {pipeline_mode = #tpu.pipeline_mode<synchronous>, transform_indices = @transform_6, window_bounds = array<i64: 9, 32, 64>}, {pipeline_mode = #tpu.pipeline_mode<synchronous>, transform_indices = @transform_7, window_bounds = array<i64: 1, 64>}, {pipeline_mode = #tpu.pipeline_mode<synchronous>, transform_indices = @transform_8, window_bounds = array<i64: 32, 64>}, {pipeline_mode = #tpu.pipeline_mode<synchronous>, transform_indices = @transform_9, window_bounds = array<i64: 1, 64>}, {pipeline_mode = #tpu.pipeline_mode<synchronous>, transform_indices = @transform_10, window_bounds = array<i64: 1, 64>}, {pipeline_mode = #tpu.pipeline_mode<synchronous>, transform_indices = @transform_11, window_bounds = array<i64: 1, 64>}, {pipeline_mode = #tpu.pipeline_mode<synchronous>, transform_indices = @transform_12, window_bounds = array<i64: 64, 32>}, {pipeline_mode = #tpu.pipeline_mode<synchronous>, transform_indices = @transform_13, window_bounds = array<i64: 32, 64>}, {pipeline_mode = #tpu.pipeline_mode<synchronous>, transform_indices = @transform_14, window_bounds = array<i64: 9, 64, 64>}, {pipeline_mode = #tpu.pipeline_mode<synchronous>, transform_indices = @transform_15, window_bounds = array<i64: 1, 64>}, {pipeline_mode = #tpu.pipeline_mode<synchronous>, transform_indices = @transform_16, window_bounds = array<i64: 32, 64>}, {pipeline_mode = #tpu.pipeline_mode<synchronous>, transform_indices = @transform_17, window_bounds = array<i64: 1, 64>}, {pipeline_mode = #tpu.pipeline_mode<synchronous>, transform_indices = @transform_18, window_bounds = array<i64: 64, 1>}, {pipeline_mode = #tpu.pipeline_mode<synchronous>, transform_indices = @transform_19, window_bounds = array<i64: 64, 1>}, {transform_indices = @transform_20, window_bounds = array<i64: 1, 64, 64>}]} {
    %c0 = arith.constant 0 : index
    %c0_0 = arith.constant 0 : index
    %c0_1 = arith.constant 0 : index
    %0 = vector.load %arg1[%c0, %c0_0, %c0_1] : memref<1x64x32xf32, #tpu.memory_space<vmem>>, vector<1x64x32xf32>
    %1 = vector.shape_cast %0 : vector<1x64x32xf32> to vector<64x32xf32>
    %c0_2 = arith.constant 0 : index
    %c0_3 = arith.constant 0 : index
    %2 = vector.load %arg19[%c0_2, %c0_3] : memref<64x1xbf16, #tpu.memory_space<vmem>>, vector<64x1xbf16>
    %c0_4 = arith.constant 0 : index
    %c0_5 = arith.constant 0 : index
    %3 = vector.load %arg20[%c0_4, %c0_5] : memref<64x1xbf16, #tpu.memory_space<vmem>>, vector<64x1xbf16>
    %c0_6 = arith.constant 0 : index
    %c0_7 = arith.constant 0 : index
    %c0_8 = arith.constant 0 : index
    %4 = vector.load %arg2[%c0_6, %c0_7, %c0_8] : memref<1x1x32xf32, #tpu.memory_space<vmem>>, vector<1x1x32xf32>
    %5 = vector.shape_cast %4 : vector<1x1x32xf32> to vector<1x32xf32>
    %6 = arith.negf %5 : vector<1x32xf32>
    %7 = math.exp %6 : vector<1x32xf32>
    %cst = arith.constant 1.000000e+00 : f32
    %8 = vector.broadcast %cst : f32 to vector<1x32xf32>
    %9 = arith.addf %8, %7 : vector<1x32xf32>
    %10 = arith.divf %8, %9 : vector<1x32xf32>
    %11 = arith.mulf %5, %10 : vector<1x32xf32>
    %c0_9 = arith.constant 0 : index
    %c0_10 = arith.constant 0 : index
    %12 = vector.load %arg9[%c0_9, %c0_10] : memref<32x64xf32, #tpu.memory_space<vmem>>, vector<32x64xf32>
    %cst_11 = arith.constant dense<0.000000e+00> : vector<1x64xf32>
    %13 = tpu.matmul %11, %12, %cst_11 {dimension_numbers = #tpu.dot_dimension_numbers<[1], [0], [0], [1], [0, 0, 1, 1], [], []>} : vector<1x32xf32>, vector<32x64xf32>, vector<1x64xf32> -> vector<1x64xf32>
    %c0_12 = arith.constant 0 : index
    %c0_13 = arith.constant 0 : index
    %14 = vector.load %arg10[%c0_12, %c0_13] : memref<1x64xf32, #tpu.memory_space<vmem>>, vector<1x64xf32>
    %15 = arith.addf %13, %14 : vector<1x64xf32>
    %c0_14 = arith.constant 0 : index
    %c0_15 = arith.constant 0 : index
    %16 = vector.load %arg3[%c0_14, %c0_15] : memref<1x32xf32, #tpu.memory_space<vmem>>, vector<1x32xf32>
    %c0_16 = arith.constant 0 : index
    %c0_17 = arith.constant 0 : index
    %17 = vector.load %arg4[%c0_16, %c0_17] : memref<1x32xf32, #tpu.memory_space<vmem>>, vector<1x32xf32>
    %c0_18 = arith.constant 0 : index
    %c0_19 = arith.constant 0 : index
    %18 = vector.load %arg5[%c0_18, %c0_19] : memref<32x32xf32, #tpu.memory_space<vmem>>, vector<32x32xf32>
    %c0_20 = arith.constant 0 : index
    %c0_21 = arith.constant 0 : index
    %19 = vector.load %arg6[%c0_20, %c0_21] : memref<32x32xf32, #tpu.memory_space<vmem>>, vector<32x32xf32>
    %cst_22 = arith.constant dense<0.000000e+00> : vector<32xf32>
    %20 = vector.multi_reduction <add>, %1, %cst_22 [0] : vector<64x32xf32> to vector<32xf32>
    %21 = vector.shape_cast %20 : vector<32xf32> to vector<1x32xf32>
    %22 = arith.mulf %1, %1 : vector<64x32xf32>
    %cst_23 = arith.constant dense<0.000000e+00> : vector<32xf32>
    %23 = vector.multi_reduction <add>, %22, %cst_23 [0] : vector<64x32xf32> to vector<32xf32>
    %24 = vector.shape_cast %23 : vector<32xf32> to vector<1x32xf32>
    %cst_24 = arith.constant dense<0.000000e+00> : vector<1x32xf32>
    %25 = tpu.matmul %21, %18, %cst_24 {dimension_numbers = #tpu.dot_dimension_numbers<[1], [0], [0], [1], [0, 0, 1, 1], [], []>} : vector<1x32xf32>, vector<32x32xf32>, vector<1x32xf32> -> vector<1x32xf32>
    %cst_25 = arith.constant dense<0.000000e+00> : vector<1x32xf32>
    %26 = tpu.matmul %24, %18, %cst_25 {dimension_numbers = #tpu.dot_dimension_numbers<[1], [0], [0], [1], [0, 0, 1, 1], [], []>} : vector<1x32xf32>, vector<32x32xf32>, vector<1x32xf32> -> vector<1x32xf32>
    %cst_26 = arith.constant 6.400000e+01 : f32
    %27 = vector.broadcast %cst_26 : f32 to vector<1x32xf32>
    %28 = arith.divf %25, %27 : vector<1x32xf32>
    %cst_27 = arith.constant 6.400000e+01 : f32
    %29 = vector.broadcast %cst_27 : f32 to vector<1x32xf32>
    %30 = arith.divf %26, %29 : vector<1x32xf32>
    %31 = arith.mulf %28, %28 : vector<1x32xf32>
    %32 = arith.subf %30, %31 : vector<1x32xf32>
    %cst_28 = arith.constant 9.99999974E-6 : f32
    %33 = vector.broadcast %cst_28 : f32 to vector<1x32xf32>
    %34 = arith.addf %32, %33 : vector<1x32xf32>
    %35 = math.rsqrt %34 : vector<1x32xf32>
    %cst_29 = arith.constant dense<0.000000e+00> : vector<1x32xf32>
    %36 = tpu.matmul %28, %19, %cst_29 {dimension_numbers = #tpu.dot_dimension_numbers<[1], [0], [0], [1], [0, 0, 1, 1], [], []>} : vector<1x32xf32>, vector<32x32xf32>, vector<1x32xf32> -> vector<1x32xf32>
    %cst_30 = arith.constant dense<0.000000e+00> : vector<1x32xf32>
    %37 = tpu.matmul %35, %19, %cst_30 {dimension_numbers = #tpu.dot_dimension_numbers<[1], [0], [0], [1], [0, 0, 1, 1], [], []>} : vector<1x32xf32>, vector<32x32xf32>, vector<1x32xf32> -> vector<1x32xf32>
    %38 = vector.broadcast %36 : vector<1x32xf32> to vector<64x32xf32>
    %39 = arith.subf %1, %38 : vector<64x32xf32>
    %40 = vector.broadcast %37 : vector<1x32xf32> to vector<64x32xf32>
    %41 = arith.mulf %39, %40 : vector<64x32xf32>
    %42 = vector.broadcast %16 : vector<1x32xf32> to vector<64x32xf32>
    %43 = arith.mulf %41, %42 : vector<64x32xf32>
    %44 = vector.broadcast %17 : vector<1x32xf32> to vector<64x32xf32>
    %45 = arith.addf %43, %44 : vector<64x32xf32>
    %46 = arith.negf %45 : vector<64x32xf32>
    %47 = math.exp %46 : vector<64x32xf32>
    %cst_31 = arith.constant 1.000000e+00 : f32
    %48 = vector.broadcast %cst_31 : f32 to vector<64x32xf32>
    %49 = arith.addf %48, %47 : vector<64x32xf32>
    %50 = arith.divf %48, %49 : vector<64x32xf32>
    %51 = arith.mulf %45, %50 : vector<64x32xf32>
    %c0_32 = arith.constant 0 : index
    %c0_33 = arith.constant 0 : index
    %52 = vector.load %arg8[%c0_32, %c0_33] : memref<1x64xf32, #tpu.memory_space<vmem>>, vector<1x64xf32>
    %53 = arith.addf %52, %15 : vector<1x64xf32>
    %54 = arith.truncf %51 : vector<64x32xf32> to vector<64x32xbf16>
    %cst_34 = arith.constant 0.000000e+00 : bf16
    %55 = vector.broadcast %cst_34 : bf16 to vector<9x32xbf16>
    %56 = vector.extract_strided_slice %54 {offsets = [0, 0], sizes = [55, 32], strides = [1, 1]} : vector<64x32xbf16> to vector<55x32xbf16>
    %57 = tpu.concatenate %55, %56 in 0 : vector<9x32xbf16>, vector<55x32xbf16> -> vector<64x32xbf16>
    %58 = vector.broadcast %2 : vector<64x1xbf16> to vector<64x32xbf16>
    %59 = arith.mulf %57, %58 : vector<64x32xbf16>
    %c0_35 = arith.constant 0 : index
    %c0_36 = arith.constant 0 : index
    %c0_37 = arith.constant 0 : index
    %60 = vector.load %arg7[%c0_35, %c0_36, %c0_37] : memref<9x32x64xbf16, #tpu.memory_space<vmem>>, vector<1x32x64xbf16>
    %61 = vector.shape_cast %60 : vector<1x32x64xbf16> to vector<32x64xbf16>
    %cst_38 = arith.constant dense<0.000000e+00> : vector<64x64xf32>
    %62 = tpu.matmul %59, %61, %cst_38 {dimension_numbers = #tpu.dot_dimension_numbers<[1], [0], [0], [1], [0, 0, 1, 1], [], []>} : vector<64x32xbf16>, vector<32x64xbf16>, vector<64x64xf32> -> vector<64x64xf32>
    %63 = vector.broadcast %53 : vector<1x64xf32> to vector<64x64xf32>
    %64 = arith.addf %63, %62 : vector<64x64xf32>
    %cst_39 = arith.constant 0.000000e+00 : bf16
    %65 = vector.broadcast %cst_39 : bf16 to vector<8x32xbf16>
    %66 = vector.extract_strided_slice %54 {offsets = [0, 0], sizes = [56, 32], strides = [1, 1]} : vector<64x32xbf16> to vector<56x32xbf16>
    %67 = tpu.concatenate %65, %66 in 0 : vector<8x32xbf16>, vector<56x32xbf16> -> vector<64x32xbf16>
    %c1 = arith.constant 1 : index
    %c0_40 = arith.constant 0 : index
    %c0_41 = arith.constant 0 : index
    %68 = vector.load %arg7[%c1, %c0_40, %c0_41] : memref<9x32x64xbf16, #tpu.memory_space<vmem>>, vector<1x32x64xbf16>
    %69 = vector.shape_cast %68 : vector<1x32x64xbf16> to vector<32x64xbf16>
    %cst_42 = arith.constant dense<0.000000e+00> : vector<64x64xf32>
    %70 = tpu.matmul %67, %69, %cst_42 {dimension_numbers = #tpu.dot_dimension_numbers<[1], [0], [0], [1], [0, 0, 1, 1], [], []>} : vector<64x32xbf16>, vector<32x64xbf16>, vector<64x64xf32> -> vector<64x64xf32>
    %71 = arith.addf %64, %70 : vector<64x64xf32>
    %cst_43 = arith.constant 0.000000e+00 : bf16
    %72 = vector.broadcast %cst_43 : bf16 to vector<7x32xbf16>
    %73 = vector.extract_strided_slice %54 {offsets = [0, 0], sizes = [57, 32], strides = [1, 1]} : vector<64x32xbf16> to vector<57x32xbf16>
    %74 = tpu.concatenate %72, %73 in 0 : vector<7x32xbf16>, vector<57x32xbf16> -> vector<64x32xbf16>
    %75 = vector.broadcast %3 : vector<64x1xbf16> to vector<64x32xbf16>
    %76 = arith.mulf %74, %75 : vector<64x32xbf16>
    %c2 = arith.constant 2 : index
    %c0_44 = arith.constant 0 : index
    %c0_45 = arith.constant 0 : index
    %77 = vector.load %arg7[%c2, %c0_44, %c0_45] : memref<9x32x64xbf16, #tpu.memory_space<vmem>>, vector<1x32x64xbf16>
    %78 = vector.shape_cast %77 : vector<1x32x64xbf16> to vector<32x64xbf16>
    %cst_46 = arith.constant dense<0.000000e+00> : vector<64x64xf32>
    %79 = tpu.matmul %76, %78, %cst_46 {dimension_numbers = #tpu.dot_dimension_numbers<[1], [0], [0], [1], [0, 0, 1, 1], [], []>} : vector<64x32xbf16>, vector<32x64xbf16>, vector<64x64xf32> -> vector<64x64xf32>
    %80 = arith.addf %71, %79 : vector<64x64xf32>
    %cst_47 = arith.constant 0.000000e+00 : bf16
    %81 = vector.broadcast %cst_47 : bf16 to vector<1x32xbf16>
    %82 = vector.extract_strided_slice %54 {offsets = [0, 0], sizes = [63, 32], strides = [1, 1]} : vector<64x32xbf16> to vector<63x32xbf16>
    %83 = tpu.concatenate %81, %82 in 0 : vector<1x32xbf16>, vector<63x32xbf16> -> vector<64x32xbf16>
    %84 = vector.broadcast %2 : vector<64x1xbf16> to vector<64x32xbf16>
    %85 = arith.mulf %83, %84 : vector<64x32xbf16>
    %c3 = arith.constant 3 : index
    %c0_48 = arith.constant 0 : index
    %c0_49 = arith.constant 0 : index
    %86 = vector.load %arg7[%c3, %c0_48, %c0_49] : memref<9x32x64xbf16, #tpu.memory_space<vmem>>, vector<1x32x64xbf16>
    %87 = vector.shape_cast %86 : vector<1x32x64xbf16> to vector<32x64xbf16>
    %cst_50 = arith.constant dense<0.000000e+00> : vector<64x64xf32>
    %88 = tpu.matmul %85, %87, %cst_50 {dimension_numbers = #tpu.dot_dimension_numbers<[1], [0], [0], [1], [0, 0, 1, 1], [], []>} : vector<64x32xbf16>, vector<32x64xbf16>, vector<64x64xf32> -> vector<64x64xf32>
    %89 = arith.addf %80, %88 : vector<64x64xf32>
    %c4 = arith.constant 4 : index
    %c0_51 = arith.constant 0 : index
    %c0_52 = arith.constant 0 : index
    %90 = vector.load %arg7[%c4, %c0_51, %c0_52] : memref<9x32x64xbf16, #tpu.memory_space<vmem>>, vector<1x32x64xbf16>
    %91 = vector.shape_cast %90 : vector<1x32x64xbf16> to vector<32x64xbf16>
    %cst_53 = arith.constant dense<0.000000e+00> : vector<64x64xf32>
    %92 = tpu.matmul %54, %91, %cst_53 {dimension_numbers = #tpu.dot_dimension_numbers<[1], [0], [0], [1], [0, 0, 1, 1], [], []>} : vector<64x32xbf16>, vector<32x64xbf16>, vector<64x64xf32> -> vector<64x64xf32>
    %93 = arith.addf %89, %92 : vector<64x64xf32>
    %94 = vector.extract_strided_slice %54 {offsets = [1, 0], sizes = [63, 32], strides = [1, 1]} : vector<64x32xbf16> to vector<63x32xbf16>
    %cst_54 = arith.constant 0.000000e+00 : bf16
    %95 = vector.broadcast %cst_54 : bf16 to vector<1x32xbf16>
    %96 = tpu.concatenate %94, %95 in 0 : vector<63x32xbf16>, vector<1x32xbf16> -> vector<64x32xbf16>
    %97 = vector.broadcast %3 : vector<64x1xbf16> to vector<64x32xbf16>
    %98 = arith.mulf %96, %97 : vector<64x32xbf16>
    %c5 = arith.constant 5 : index
    %c0_55 = arith.constant 0 : index
    %c0_56 = arith.constant 0 : index
    %99 = vector.load %arg7[%c5, %c0_55, %c0_56] : memref<9x32x64xbf16, #tpu.memory_space<vmem>>, vector<1x32x64xbf16>
    %100 = vector.shape_cast %99 : vector<1x32x64xbf16> to vector<32x64xbf16>
    %cst_57 = arith.constant dense<0.000000e+00> : vector<64x64xf32>
    %101 = tpu.matmul %98, %100, %cst_57 {dimension_numbers = #tpu.dot_dimension_numbers<[1], [0], [0], [1], [0, 0, 1, 1], [], []>} : vector<64x32xbf16>, vector<32x64xbf16>, vector<64x64xf32> -> vector<64x64xf32>
    %102 = arith.addf %93, %101 : vector<64x64xf32>
    %103 = vector.extract_strided_slice %54 {offsets = [7, 0], sizes = [57, 32], strides = [1, 1]} : vector<64x32xbf16> to vector<57x32xbf16>
    %cst_58 = arith.constant 0.000000e+00 : bf16
    %104 = vector.broadcast %cst_58 : bf16 to vector<7x32xbf16>
    %105 = tpu.concatenate %103, %104 in 0 : vector<57x32xbf16>, vector<7x32xbf16> -> vector<64x32xbf16>
    %106 = vector.broadcast %2 : vector<64x1xbf16> to vector<64x32xbf16>
    %107 = arith.mulf %105, %106 : vector<64x32xbf16>
    %c6 = arith.constant 6 : index
    %c0_59 = arith.constant 0 : index
    %c0_60 = arith.constant 0 : index
    %108 = vector.load %arg7[%c6, %c0_59, %c0_60] : memref<9x32x64xbf16, #tpu.memory_space<vmem>>, vector<1x32x64xbf16>
    %109 = vector.shape_cast %108 : vector<1x32x64xbf16> to vector<32x64xbf16>
    %cst_61 = arith.constant dense<0.000000e+00> : vector<64x64xf32>
    %110 = tpu.matmul %107, %109, %cst_61 {dimension_numbers = #tpu.dot_dimension_numbers<[1], [0], [0], [1], [0, 0, 1, 1], [], []>} : vector<64x32xbf16>, vector<32x64xbf16>, vector<64x64xf32> -> vector<64x64xf32>
    %111 = arith.addf %102, %110 : vector<64x64xf32>
    %112 = vector.extract_strided_slice %54 {offsets = [8, 0], sizes = [56, 32], strides = [1, 1]} : vector<64x32xbf16> to vector<56x32xbf16>
    %cst_62 = arith.constant 0.000000e+00 : bf16
    %113 = vector.broadcast %cst_62 : bf16 to vector<8x32xbf16>
    %114 = tpu.concatenate %112, %113 in 0 : vector<56x32xbf16>, vector<8x32xbf16> -> vector<64x32xbf16>
    %c7 = arith.constant 7 : index
    %c0_63 = arith.constant 0 : index
    %c0_64 = arith.constant 0 : index
    %115 = vector.load %arg7[%c7, %c0_63, %c0_64] : memref<9x32x64xbf16, #tpu.memory_space<vmem>>, vector<1x32x64xbf16>
    %116 = vector.shape_cast %115 : vector<1x32x64xbf16> to vector<32x64xbf16>
    %cst_65 = arith.constant dense<0.000000e+00> : vector<64x64xf32>
    %117 = tpu.matmul %114, %116, %cst_65 {dimension_numbers = #tpu.dot_dimension_numbers<[1], [0], [0], [1], [0, 0, 1, 1], [], []>} : vector<64x32xbf16>, vector<32x64xbf16>, vector<64x64xf32> -> vector<64x64xf32>
    %118 = arith.addf %111, %117 : vector<64x64xf32>
    %119 = vector.extract_strided_slice %54 {offsets = [9, 0], sizes = [55, 32], strides = [1, 1]} : vector<64x32xbf16> to vector<55x32xbf16>
    %cst_66 = arith.constant 0.000000e+00 : bf16
    %120 = vector.broadcast %cst_66 : bf16 to vector<9x32xbf16>
    %121 = tpu.concatenate %119, %120 in 0 : vector<55x32xbf16>, vector<9x32xbf16> -> vector<64x32xbf16>
    %122 = vector.broadcast %3 : vector<64x1xbf16> to vector<64x32xbf16>
    %123 = arith.mulf %121, %122 : vector<64x32xbf16>
    %c8 = arith.constant 8 : index
    %c0_67 = arith.constant 0 : index
    %c0_68 = arith.constant 0 : index
    %124 = vector.load %arg7[%c8, %c0_67, %c0_68] : memref<9x32x64xbf16, #tpu.memory_space<vmem>>, vector<1x32x64xbf16>
    %125 = vector.shape_cast %124 : vector<1x32x64xbf16> to vector<32x64xbf16>
    %cst_69 = arith.constant dense<0.000000e+00> : vector<64x64xf32>
    %126 = tpu.matmul %123, %125, %cst_69 {dimension_numbers = #tpu.dot_dimension_numbers<[1], [0], [0], [1], [0, 0, 1, 1], [], []>} : vector<64x32xbf16>, vector<32x64xbf16>, vector<64x64xf32> -> vector<64x64xf32>
    %127 = arith.addf %118, %126 : vector<64x64xf32>
    %c0_70 = arith.constant 0 : index
    %c0_71 = arith.constant 0 : index
    %128 = vector.load %arg11[%c0_70, %c0_71] : memref<1x64xf32, #tpu.memory_space<vmem>>, vector<1x64xf32>
    %c0_72 = arith.constant 0 : index
    %c0_73 = arith.constant 0 : index
    %129 = vector.load %arg12[%c0_72, %c0_73] : memref<1x64xf32, #tpu.memory_space<vmem>>, vector<1x64xf32>
    %c0_74 = arith.constant 0 : index
    %c0_75 = arith.constant 0 : index
    %130 = vector.load %arg13[%c0_74, %c0_75] : memref<64x32xf32, #tpu.memory_space<vmem>>, vector<64x32xf32>
    %c0_76 = arith.constant 0 : index
    %c0_77 = arith.constant 0 : index
    %131 = vector.load %arg14[%c0_76, %c0_77] : memref<32x64xf32, #tpu.memory_space<vmem>>, vector<32x64xf32>
    %cst_78 = arith.constant dense<0.000000e+00> : vector<64xf32>
    %132 = vector.multi_reduction <add>, %127, %cst_78 [0] : vector<64x64xf32> to vector<64xf32>
    %133 = vector.shape_cast %132 : vector<64xf32> to vector<1x64xf32>
    %134 = arith.mulf %127, %127 : vector<64x64xf32>
    %cst_79 = arith.constant dense<0.000000e+00> : vector<64xf32>
    %135 = vector.multi_reduction <add>, %134, %cst_79 [0] : vector<64x64xf32> to vector<64xf32>
    %136 = vector.shape_cast %135 : vector<64xf32> to vector<1x64xf32>
    %cst_80 = arith.constant dense<0.000000e+00> : vector<1x32xf32>
    %137 = tpu.matmul %133, %130, %cst_80 {dimension_numbers = #tpu.dot_dimension_numbers<[1], [0], [0], [1], [0, 0, 1, 1], [], []>} : vector<1x64xf32>, vector<64x32xf32>, vector<1x32xf32> -> vector<1x32xf32>
    %cst_81 = arith.constant dense<0.000000e+00> : vector<1x32xf32>
    %138 = tpu.matmul %136, %130, %cst_81 {dimension_numbers = #tpu.dot_dimension_numbers<[1], [0], [0], [1], [0, 0, 1, 1], [], []>} : vector<1x64xf32>, vector<64x32xf32>, vector<1x32xf32> -> vector<1x32xf32>
    %cst_82 = arith.constant 1.280000e+02 : f32
    %139 = vector.broadcast %cst_82 : f32 to vector<1x32xf32>
    %140 = arith.divf %137, %139 : vector<1x32xf32>
    %cst_83 = arith.constant 1.280000e+02 : f32
    %141 = vector.broadcast %cst_83 : f32 to vector<1x32xf32>
    %142 = arith.divf %138, %141 : vector<1x32xf32>
    %143 = arith.mulf %140, %140 : vector<1x32xf32>
    %144 = arith.subf %142, %143 : vector<1x32xf32>
    %cst_84 = arith.constant 9.99999974E-6 : f32
    %145 = vector.broadcast %cst_84 : f32 to vector<1x32xf32>
    %146 = arith.addf %144, %145 : vector<1x32xf32>
    %147 = math.rsqrt %146 : vector<1x32xf32>
    %cst_85 = arith.constant dense<0.000000e+00> : vector<1x64xf32>
    %148 = tpu.matmul %140, %131, %cst_85 {dimension_numbers = #tpu.dot_dimension_numbers<[1], [0], [0], [1], [0, 0, 1, 1], [], []>} : vector<1x32xf32>, vector<32x64xf32>, vector<1x64xf32> -> vector<1x64xf32>
    %cst_86 = arith.constant dense<0.000000e+00> : vector<1x64xf32>
    %149 = tpu.matmul %147, %131, %cst_86 {dimension_numbers = #tpu.dot_dimension_numbers<[1], [0], [0], [1], [0, 0, 1, 1], [], []>} : vector<1x32xf32>, vector<32x64xf32>, vector<1x64xf32> -> vector<1x64xf32>
    %150 = vector.broadcast %148 : vector<1x64xf32> to vector<64x64xf32>
    %151 = arith.subf %127, %150 : vector<64x64xf32>
    %152 = vector.broadcast %149 : vector<1x64xf32> to vector<64x64xf32>
    %153 = arith.mulf %151, %152 : vector<64x64xf32>
    %154 = vector.broadcast %128 : vector<1x64xf32> to vector<64x64xf32>
    %155 = arith.mulf %153, %154 : vector<64x64xf32>
    %156 = vector.broadcast %129 : vector<1x64xf32> to vector<64x64xf32>
    %157 = arith.addf %155, %156 : vector<64x64xf32>
    %158 = arith.negf %157 : vector<64x64xf32>
    %159 = math.exp %158 : vector<64x64xf32>
    %cst_87 = arith.constant 1.000000e+00 : f32
    %160 = vector.broadcast %cst_87 : f32 to vector<64x64xf32>
    %161 = arith.addf %160, %159 : vector<64x64xf32>
    %162 = arith.divf %160, %161 : vector<64x64xf32>
    %163 = arith.mulf %157, %162 : vector<64x64xf32>
    %164 = arith.truncf %1 : vector<64x32xf32> to vector<64x32xbf16>
    %c0_88 = arith.constant 0 : index
    %c0_89 = arith.constant 0 : index
    %165 = vector.load %arg17[%c0_88, %c0_89] : memref<32x64xbf16, #tpu.memory_space<vmem>>, vector<32x64xbf16>
    %cst_90 = arith.constant dense<0.000000e+00> : vector<64x64xf32>
    %166 = tpu.matmul %164, %165, %cst_90 {dimension_numbers = #tpu.dot_dimension_numbers<[1], [0], [0], [1], [0, 0, 1, 1], [], []>} : vector<64x32xbf16>, vector<32x64xbf16>, vector<64x64xf32> -> vector<64x64xf32>
    %c0_91 = arith.constant 0 : index
    %c0_92 = arith.constant 0 : index
    %167 = vector.load %arg18[%c0_91, %c0_92] : memref<1x64xf32, #tpu.memory_space<vmem>>, vector<1x64xf32>
    %168 = vector.broadcast %167 : vector<1x64xf32> to vector<64x64xf32>
    %169 = arith.addf %166, %168 : vector<64x64xf32>
    %c0_93 = arith.constant 0 : index
    %c0_94 = arith.constant 0 : index
    %170 = vector.load %arg16[%c0_93, %c0_94] : memref<1x64xf32, #tpu.memory_space<vmem>>, vector<1x64xf32>
    %171 = vector.broadcast %170 : vector<1x64xf32> to vector<64x64xf32>
    %172 = arith.addf %171, %169 : vector<64x64xf32>
    %173 = arith.truncf %163 : vector<64x64xf32> to vector<64x64xbf16>
    %cst_95 = arith.constant 0.000000e+00 : bf16
    %174 = vector.broadcast %cst_95 : bf16 to vector<9x64xbf16>
    %175 = vector.extract_strided_slice %173 {offsets = [0, 0], sizes = [55, 64], strides = [1, 1]} : vector<64x64xbf16> to vector<55x64xbf16>
    %176 = tpu.concatenate %174, %175 in 0 : vector<9x64xbf16>, vector<55x64xbf16> -> vector<64x64xbf16>
    %177 = vector.broadcast %2 : vector<64x1xbf16> to vector<64x64xbf16>
    %178 = arith.mulf %176, %177 : vector<64x64xbf16>
    %c0_96 = arith.constant 0 : index
    %c0_97 = arith.constant 0 : index
    %c0_98 = arith.constant 0 : index
    %179 = vector.load %arg15[%c0_96, %c0_97, %c0_98] : memref<9x64x64xbf16, #tpu.memory_space<vmem>>, vector<1x64x64xbf16>
    %180 = vector.shape_cast %179 : vector<1x64x64xbf16> to vector<64x64xbf16>
    %cst_99 = arith.constant dense<0.000000e+00> : vector<64x64xf32>
    %181 = tpu.matmul %178, %180, %cst_99 {dimension_numbers = #tpu.dot_dimension_numbers<[1], [0], [0], [1], [0, 0, 1, 1], [], []>} : vector<64x64xbf16>, vector<64x64xbf16>, vector<64x64xf32> -> vector<64x64xf32>
    %182 = arith.addf %172, %181 : vector<64x64xf32>
    %cst_100 = arith.constant 0.000000e+00 : bf16
    %183 = vector.broadcast %cst_100 : bf16 to vector<8x64xbf16>
    %184 = vector.extract_strided_slice %173 {offsets = [0, 0], sizes = [56, 64], strides = [1, 1]} : vector<64x64xbf16> to vector<56x64xbf16>
    %185 = tpu.concatenate %183, %184 in 0 : vector<8x64xbf16>, vector<56x64xbf16> -> vector<64x64xbf16>
    %c1_101 = arith.constant 1 : index
    %c0_102 = arith.constant 0 : index
    %c0_103 = arith.constant 0 : index
    %186 = vector.load %arg15[%c1_101, %c0_102, %c0_103] : memref<9x64x64xbf16, #tpu.memory_space<vmem>>, vector<1x64x64xbf16>
    %187 = vector.shape_cast %186 : vector<1x64x64xbf16> to vector<64x64xbf16>
    %cst_104 = arith.constant dense<0.000000e+00> : vector<64x64xf32>
    %188 = tpu.matmul %185, %187, %cst_104 {dimension_numbers = #tpu.dot_dimension_numbers<[1], [0], [0], [1], [0, 0, 1, 1], [], []>} : vector<64x64xbf16>, vector<64x64xbf16>, vector<64x64xf32> -> vector<64x64xf32>
    %189 = arith.addf %182, %188 : vector<64x64xf32>
    %cst_105 = arith.constant 0.000000e+00 : bf16
    %190 = vector.broadcast %cst_105 : bf16 to vector<7x64xbf16>
    %191 = vector.extract_strided_slice %173 {offsets = [0, 0], sizes = [57, 64], strides = [1, 1]} : vector<64x64xbf16> to vector<57x64xbf16>
    %192 = tpu.concatenate %190, %191 in 0 : vector<7x64xbf16>, vector<57x64xbf16> -> vector<64x64xbf16>
    %193 = vector.broadcast %3 : vector<64x1xbf16> to vector<64x64xbf16>
    %194 = arith.mulf %192, %193 : vector<64x64xbf16>
    %c2_106 = arith.constant 2 : index
    %c0_107 = arith.constant 0 : index
    %c0_108 = arith.constant 0 : index
    %195 = vector.load %arg15[%c2_106, %c0_107, %c0_108] : memref<9x64x64xbf16, #tpu.memory_space<vmem>>, vector<1x64x64xbf16>
    %196 = vector.shape_cast %195 : vector<1x64x64xbf16> to vector<64x64xbf16>
    %cst_109 = arith.constant dense<0.000000e+00> : vector<64x64xf32>
    %197 = tpu.matmul %194, %196, %cst_109 {dimension_numbers = #tpu.dot_dimension_numbers<[1], [0], [0], [1], [0, 0, 1, 1], [], []>} : vector<64x64xbf16>, vector<64x64xbf16>, vector<64x64xf32> -> vector<64x64xf32>
    %198 = arith.addf %189, %197 : vector<64x64xf32>
    %cst_110 = arith.constant 0.000000e+00 : bf16
    %199 = vector.broadcast %cst_110 : bf16 to vector<1x64xbf16>
    %200 = vector.extract_strided_slice %173 {offsets = [0, 0], sizes = [63, 64], strides = [1, 1]} : vector<64x64xbf16> to vector<63x64xbf16>
    %201 = tpu.concatenate %199, %200 in 0 : vector<1x64xbf16>, vector<63x64xbf16> -> vector<64x64xbf16>
    %202 = vector.broadcast %2 : vector<64x1xbf16> to vector<64x64xbf16>
    %203 = arith.mulf %201, %202 : vector<64x64xbf16>
    %c3_111 = arith.constant 3 : index
    %c0_112 = arith.constant 0 : index
    %c0_113 = arith.constant 0 : index
    %204 = vector.load %arg15[%c3_111, %c0_112, %c0_113] : memref<9x64x64xbf16, #tpu.memory_space<vmem>>, vector<1x64x64xbf16>
    %205 = vector.shape_cast %204 : vector<1x64x64xbf16> to vector<64x64xbf16>
    %cst_114 = arith.constant dense<0.000000e+00> : vector<64x64xf32>
    %206 = tpu.matmul %203, %205, %cst_114 {dimension_numbers = #tpu.dot_dimension_numbers<[1], [0], [0], [1], [0, 0, 1, 1], [], []>} : vector<64x64xbf16>, vector<64x64xbf16>, vector<64x64xf32> -> vector<64x64xf32>
    %207 = arith.addf %198, %206 : vector<64x64xf32>
    %c4_115 = arith.constant 4 : index
    %c0_116 = arith.constant 0 : index
    %c0_117 = arith.constant 0 : index
    %208 = vector.load %arg15[%c4_115, %c0_116, %c0_117] : memref<9x64x64xbf16, #tpu.memory_space<vmem>>, vector<1x64x64xbf16>
    %209 = vector.shape_cast %208 : vector<1x64x64xbf16> to vector<64x64xbf16>
    %cst_118 = arith.constant dense<0.000000e+00> : vector<64x64xf32>
    %210 = tpu.matmul %173, %209, %cst_118 {dimension_numbers = #tpu.dot_dimension_numbers<[1], [0], [0], [1], [0, 0, 1, 1], [], []>} : vector<64x64xbf16>, vector<64x64xbf16>, vector<64x64xf32> -> vector<64x64xf32>
    %211 = arith.addf %207, %210 : vector<64x64xf32>
    %212 = vector.extract_strided_slice %173 {offsets = [1, 0], sizes = [63, 64], strides = [1, 1]} : vector<64x64xbf16> to vector<63x64xbf16>
    %cst_119 = arith.constant 0.000000e+00 : bf16
    %213 = vector.broadcast %cst_119 : bf16 to vector<1x64xbf16>
    %214 = tpu.concatenate %212, %213 in 0 : vector<63x64xbf16>, vector<1x64xbf16> -> vector<64x64xbf16>
    %215 = vector.broadcast %3 : vector<64x1xbf16> to vector<64x64xbf16>
    %216 = arith.mulf %214, %215 : vector<64x64xbf16>
    %c5_120 = arith.constant 5 : index
    %c0_121 = arith.constant 0 : index
    %c0_122 = arith.constant 0 : index
    %217 = vector.load %arg15[%c5_120, %c0_121, %c0_122] : memref<9x64x64xbf16, #tpu.memory_space<vmem>>, vector<1x64x64xbf16>
    %218 = vector.shape_cast %217 : vector<1x64x64xbf16> to vector<64x64xbf16>
    %cst_123 = arith.constant dense<0.000000e+00> : vector<64x64xf32>
    %219 = tpu.matmul %216, %218, %cst_123 {dimension_numbers = #tpu.dot_dimension_numbers<[1], [0], [0], [1], [0, 0, 1, 1], [], []>} : vector<64x64xbf16>, vector<64x64xbf16>, vector<64x64xf32> -> vector<64x64xf32>
    %220 = arith.addf %211, %219 : vector<64x64xf32>
    %221 = vector.extract_strided_slice %173 {offsets = [7, 0], sizes = [57, 64], strides = [1, 1]} : vector<64x64xbf16> to vector<57x64xbf16>
    %cst_124 = arith.constant 0.000000e+00 : bf16
    %222 = vector.broadcast %cst_124 : bf16 to vector<7x64xbf16>
    %223 = tpu.concatenate %221, %222 in 0 : vector<57x64xbf16>, vector<7x64xbf16> -> vector<64x64xbf16>
    %224 = vector.broadcast %2 : vector<64x1xbf16> to vector<64x64xbf16>
    %225 = arith.mulf %223, %224 : vector<64x64xbf16>
    %c6_125 = arith.constant 6 : index
    %c0_126 = arith.constant 0 : index
    %c0_127 = arith.constant 0 : index
    %226 = vector.load %arg15[%c6_125, %c0_126, %c0_127] : memref<9x64x64xbf16, #tpu.memory_space<vmem>>, vector<1x64x64xbf16>
    %227 = vector.shape_cast %226 : vector<1x64x64xbf16> to vector<64x64xbf16>
    %cst_128 = arith.constant dense<0.000000e+00> : vector<64x64xf32>
    %228 = tpu.matmul %225, %227, %cst_128 {dimension_numbers = #tpu.dot_dimension_numbers<[1], [0], [0], [1], [0, 0, 1, 1], [], []>} : vector<64x64xbf16>, vector<64x64xbf16>, vector<64x64xf32> -> vector<64x64xf32>
    %229 = arith.addf %220, %228 : vector<64x64xf32>
    %230 = vector.extract_strided_slice %173 {offsets = [8, 0], sizes = [56, 64], strides = [1, 1]} : vector<64x64xbf16> to vector<56x64xbf16>
    %cst_129 = arith.constant 0.000000e+00 : bf16
    %231 = vector.broadcast %cst_129 : bf16 to vector<8x64xbf16>
    %232 = tpu.concatenate %230, %231 in 0 : vector<56x64xbf16>, vector<8x64xbf16> -> vector<64x64xbf16>
    %c7_130 = arith.constant 7 : index
    %c0_131 = arith.constant 0 : index
    %c0_132 = arith.constant 0 : index
    %233 = vector.load %arg15[%c7_130, %c0_131, %c0_132] : memref<9x64x64xbf16, #tpu.memory_space<vmem>>, vector<1x64x64xbf16>
    %234 = vector.shape_cast %233 : vector<1x64x64xbf16> to vector<64x64xbf16>
    %cst_133 = arith.constant dense<0.000000e+00> : vector<64x64xf32>
    %235 = tpu.matmul %232, %234, %cst_133 {dimension_numbers = #tpu.dot_dimension_numbers<[1], [0], [0], [1], [0, 0, 1, 1], [], []>} : vector<64x64xbf16>, vector<64x64xbf16>, vector<64x64xf32> -> vector<64x64xf32>
    %236 = arith.addf %229, %235 : vector<64x64xf32>
    %237 = vector.extract_strided_slice %173 {offsets = [9, 0], sizes = [55, 64], strides = [1, 1]} : vector<64x64xbf16> to vector<55x64xbf16>
    %cst_134 = arith.constant 0.000000e+00 : bf16
    %238 = vector.broadcast %cst_134 : bf16 to vector<9x64xbf16>
    %239 = tpu.concatenate %237, %238 in 0 : vector<55x64xbf16>, vector<9x64xbf16> -> vector<64x64xbf16>
    %240 = vector.broadcast %3 : vector<64x1xbf16> to vector<64x64xbf16>
    %241 = arith.mulf %239, %240 : vector<64x64xbf16>
    %c8_135 = arith.constant 8 : index
    %c0_136 = arith.constant 0 : index
    %c0_137 = arith.constant 0 : index
    %242 = vector.load %arg15[%c8_135, %c0_136, %c0_137] : memref<9x64x64xbf16, #tpu.memory_space<vmem>>, vector<1x64x64xbf16>
    %243 = vector.shape_cast %242 : vector<1x64x64xbf16> to vector<64x64xbf16>
    %cst_138 = arith.constant dense<0.000000e+00> : vector<64x64xf32>
    %244 = tpu.matmul %241, %243, %cst_138 {dimension_numbers = #tpu.dot_dimension_numbers<[1], [0], [0], [1], [0, 0, 1, 1], [], []>} : vector<64x64xbf16>, vector<64x64xbf16>, vector<64x64xf32> -> vector<64x64xf32>
    %245 = arith.addf %236, %244 : vector<64x64xf32>
    %246 = arith.truncf %245 : vector<64x64xf32> to vector<64x64xbf16>
    %c0_139 = arith.constant 0 : index
    %c0_140 = arith.constant 0 : index
    %c0_141 = arith.constant 0 : index
    %247 = vector.load %arg21[%c0_139, %c0_140, %c0_141] : memref<1x64x64xbf16, #tpu.memory_space<vmem>>, vector<1x64x64xbf16>
    %248 = vector.shape_cast %247 : vector<1x64x64xbf16> to vector<64x64xbf16>
    %249 = vector.shape_cast %246 : vector<64x64xbf16> to vector<1x64x64xbf16>
    tpu.vector_store %arg21[%c0_139, %c0_140, %c0_141], %249 {strides = array<i32>} : memref<1x64x64xbf16, #tpu.memory_space<vmem>>, vector<1x64x64xbf16>,
    return
  }
  func.func @transform_0(%arg0: i32) -> (i32, i32, i32) {
    %c0_i32 = arith.constant 0 : i32
    %c0_i32_0 = arith.constant 0 : i32
    %c0_i32_1 = arith.constant 0 : i32
    return %arg0, %c0_i32, %c0_i32_0 : i32, i32, i32
  }
  func.func @transform_1(%arg0: i32) -> (i32, i32, i32) {
    %c0_i32 = arith.constant 0 : i32
    %c0_i32_0 = arith.constant 0 : i32
    %c0_i32_1 = arith.constant 0 : i32
    return %arg0, %c0_i32, %c0_i32_0 : i32, i32, i32
  }
  func.func @transform_2(%arg0: i32) -> (i32, i32) {
    %c0_i32 = arith.constant 0 : i32
    %c0_i32_0 = arith.constant 0 : i32
    %c0_i32_1 = arith.constant 0 : i32
    return %c0_i32, %c0_i32_0 : i32, i32
  }
  func.func @transform_3(%arg0: i32) -> (i32, i32) {
    %c0_i32 = arith.constant 0 : i32
    %c0_i32_0 = arith.constant 0 : i32
    %c0_i32_1 = arith.constant 0 : i32
    return %c0_i32, %c0_i32_0 : i32, i32
  }
  func.func @transform_4(%arg0: i32) -> (i32, i32) {
    %c0_i32 = arith.constant 0 : i32
    %c0_i32_0 = arith.constant 0 : i32
    %c0_i32_1 = arith.constant 0 : i32
    return %c0_i32, %c0_i32_0 : i32, i32
  }
  func.func @transform_5(%arg0: i32) -> (i32, i32) {
    %c0_i32 = arith.constant 0 : i32
    %c0_i32_0 = arith.constant 0 : i32
    %c0_i32_1 = arith.constant 0 : i32
    return %c0_i32, %c0_i32_0 : i32, i32
  }
  func.func @transform_6(%arg0: i32) -> (i32, i32, i32) {
    %c0_i32 = arith.constant 0 : i32
    %c0_i32_0 = arith.constant 0 : i32
    %c0_i32_1 = arith.constant 0 : i32
    %c0_i32_2 = arith.constant 0 : i32
    return %c0_i32, %c0_i32_0, %c0_i32_1 : i32, i32, i32
  }
  func.func @transform_7(%arg0: i32) -> (i32, i32) {
    %c0_i32 = arith.constant 0 : i32
    %c0_i32_0 = arith.constant 0 : i32
    %c0_i32_1 = arith.constant 0 : i32
    return %c0_i32, %c0_i32_0 : i32, i32
  }
  func.func @transform_8(%arg0: i32) -> (i32, i32) {
    %c0_i32 = arith.constant 0 : i32
    %c0_i32_0 = arith.constant 0 : i32
    %c0_i32_1 = arith.constant 0 : i32
    return %c0_i32, %c0_i32_0 : i32, i32
  }
  func.func @transform_9(%arg0: i32) -> (i32, i32) {
    %c0_i32 = arith.constant 0 : i32
    %c0_i32_0 = arith.constant 0 : i32
    %c0_i32_1 = arith.constant 0 : i32
    return %c0_i32, %c0_i32_0 : i32, i32
  }
  func.func @transform_10(%arg0: i32) -> (i32, i32) {
    %c0_i32 = arith.constant 0 : i32
    %c0_i32_0 = arith.constant 0 : i32
    %c0_i32_1 = arith.constant 0 : i32
    return %c0_i32, %c0_i32_0 : i32, i32
  }
  func.func @transform_11(%arg0: i32) -> (i32, i32) {
    %c0_i32 = arith.constant 0 : i32
    %c0_i32_0 = arith.constant 0 : i32
    %c0_i32_1 = arith.constant 0 : i32
    return %c0_i32, %c0_i32_0 : i32, i32
  }
  func.func @transform_12(%arg0: i32) -> (i32, i32) {
    %c0_i32 = arith.constant 0 : i32
    %c0_i32_0 = arith.constant 0 : i32
    %c0_i32_1 = arith.constant 0 : i32
    return %c0_i32, %c0_i32_0 : i32, i32
  }
  func.func @transform_13(%arg0: i32) -> (i32, i32) {
    %c0_i32 = arith.constant 0 : i32
    %c0_i32_0 = arith.constant 0 : i32
    %c0_i32_1 = arith.constant 0 : i32
    return %c0_i32, %c0_i32_0 : i32, i32
  }
  func.func @transform_14(%arg0: i32) -> (i32, i32, i32) {
    %c0_i32 = arith.constant 0 : i32
    %c0_i32_0 = arith.constant 0 : i32
    %c0_i32_1 = arith.constant 0 : i32
    %c0_i32_2 = arith.constant 0 : i32
    return %c0_i32, %c0_i32_0, %c0_i32_1 : i32, i32, i32
  }
  func.func @transform_15(%arg0: i32) -> (i32, i32) {
    %c0_i32 = arith.constant 0 : i32
    %c0_i32_0 = arith.constant 0 : i32
    %c0_i32_1 = arith.constant 0 : i32
    return %c0_i32, %c0_i32_0 : i32, i32
  }
  func.func @transform_16(%arg0: i32) -> (i32, i32) {
    %c0_i32 = arith.constant 0 : i32
    %c0_i32_0 = arith.constant 0 : i32
    %c0_i32_1 = arith.constant 0 : i32
    return %c0_i32, %c0_i32_0 : i32, i32
  }
  func.func @transform_17(%arg0: i32) -> (i32, i32) {
    %c0_i32 = arith.constant 0 : i32
    %c0_i32_0 = arith.constant 0 : i32
    %c0_i32_1 = arith.constant 0 : i32
    return %c0_i32, %c0_i32_0 : i32, i32
  }
  func.func @transform_18(%arg0: i32) -> (i32, i32) {
    %c0_i32 = arith.constant 0 : i32
    %c0_i32_0 = arith.constant 0 : i32
    %c0_i32_1 = arith.constant 0 : i32
    return %c0_i32, %c0_i32_0 : i32, i32
  }
  func.func @transform_19(%arg0: i32) -> (i32, i32) {
    %c0_i32 = arith.constant 0 : i32
    %c0_i32_0 = arith.constant 0 : i32
    %c0_i32_1 = arith.constant 0 : i32
    return %c0_i32, %c0_i32_0 : i32, i32
  }
  func.func @transform_20(%arg0: i32) -> (i32, i32, i32) {
    %c0_i32 = arith.constant 0 : i32
    %c0_i32_0 = arith.constant 0 : i32
    %c0_i32_1 = arith.constant 0 : i32
    return %arg0, %c0_i32, %c0_i32_0 : i32, i32, i32
  }
}

</mosaic_0001>

<bundles_post_ra>
// kernel: resblock_forward.1
= control target key start
LH: loop header
LB: loop body
LE: loop exit
PB: predicated region body
PF: predicated region fallthrough
CT: control target
= control target key end

     0   :  { %s7071_s0 = inlined_call_operand.vmem [shape: f32[2,64,32], index: 0, kind: input, shape index: {}]   ;;  %s7072_s1 = inlined_call_operand.vmem [shape: f32[2,1,32], index: 1, kind: input, shape index: {}]   ;;  %s7073_s2 = inlined_call_operand.vmem [shape: f32[1,32], index: 2, kind: input, shape index: {}]   ;;  %s7074_s3 = inlined_call_operand.vmem [shape: f32[1,32], index: 3, kind: input, shape index: {}]   ;;  %s7075_s4 = inlined_call_operand.vmem [shape: f32[32,32], index: 4, kind: input, shape index: {}]   ;;  %s7076_s5 = inlined_call_operand.vmem [shape: f32[32,32], index: 5, kind: input, shape index: {}]   ;;  %s7077_s6 = inlined_call_operand.vmem [shape: bf16[9,32,64], index: 6, kind: input, shape index: {}]   ;;  %s7078_s7 = inlined_call_operand.vmem [shape: f32[1,64], index: 7, kind: input, shape index: {}]   ;;  %s7079_s8 = inlined_call_operand.vmem [shape: f32[32,64], index: 8, kind: input, shape index: {}]   ;;  %s7080_s9 = inlined_call_operand.vmem [shape: f32[1,64], index: 9, kind: input, shape index: {}]   ;;  %s7081_s10 = inlined_call_operand.vmem [shape: f32[1,64], index: 10, kind: input, shape index: {}]   ;;  %s7082_s11 = inlined_call_operand.vmem [shape: f32[1,64], index: 11, kind: input, shape index: {}]   ;;  %s7083_s12 = inlined_call_operand.vmem [shape: f32[64,32], index: 12, kind: input, shape index: {}]   ;;  %s7084_s13 = inlined_call_operand.vmem [shape: f32[32,64], index: 13, kind: input, shape index: {}]   ;;  %s7085_s14 = inlined_call_operand.vmem [shape: bf16[9,64,64], index: 14, kind: input, shape index: {}]   ;;  %s7086_s15 = inlined_call_operand.vmem [shape: f32[1,64], index: 15, kind: input, shape index: {}]   ;;  %s7087_s16 = inlined_call_operand.vmem [shape: bf16[32,64], index: 16, kind: input, shape index: {}]   ;;  %s7088_s17 = inlined_call_operand.vmem [shape: f32[1,64], index: 17, kind: input, shape index: {}]   ;;  %s7089_s18 = inlined_call_operand.vmem [shape: bf16[64,1], index: 18, kind: input, shape index: {}]   ;;  %s7090_s19 = inlined_call_operand.vmem [shape: bf16[64,1], index: 19, kind: input, shape index: {}]   ;;  %s7091_s20 = inlined_call_operand.hbm [shape: bf16[2,64,64], index: 20, kind: output, shape index: {}]  }
   0x1   :  { %7097 = sst [smem:[#allocation8_spill]] %s7071_s0 }
   0x2   :  { %7098 = sst [smem:[#allocation9_spill]] %s7072_s1 }
   0x3   :  { %7099 = sst [smem:[#allocation10_spill]] %s7073_s2 }
   0x4   :  { %7100 = sst [smem:[#allocation11_spill]] %s7074_s3 }
   0x5   :  { %7101 = sst [smem:[#allocation12_spill]] %s7075_s4 }
   0x6   :  { %7102 = sst [smem:[#allocation13_spill]] %s7076_s5 }
   0x7   :  { %7103 = sst [smem:[#allocation14_spill]] %s7079_s8 }
   0x8   :  { %25 = vsyncpa [#allocation3], 0 }
   0x9   :  { %27 = vsyncpa [#allocation3 + $0x1], 0  ;;  %s5875_s1 = smov 0   ;;  %s5877_s22 = smov 0  }
   0xa   :  { %s5879_s23 = smov 0   ;;  %s5881_s24 = smov 0  }
   0xb LB: > { %7104 = sst [smem:[#allocation5_spill]] %s5756_s23  ;;  %s5896_s2 = sadd.s32 4294967295, %s5760_s24   ;;  %s5760_s24 = sphi %s5881_s24, %s7124_s24   ;;  %s5756_s23 = sphi %s5879_s23, %s7126_s23   ;;  %s5752_s22 = sphi %s5877_s22, %s7128_s22   ;;  %s5748_s1 = sphi %s5875_s1, %s7127_s1  }
   0xc   : > { %s4426_s25 = sadd.s32 4294967294, %s5760_s24   ;;  %s5900_s3 = sadd.s32 1, %s5760_s24  }
   0xd   : > { %7105 = sst [smem:[#allocation6_spill]] %s5900_s3  ;;  %s470_s26 = sadd.s32 1, %s5756_s23 }
   0xe   : > { %s467_s27 = ssub.s32 %s5760_s24, %s5900_s3  ;;  %p480_p0 = scmp.ne.s32.totalorder %s5756_s23, %s5752_s22 }
   0xf   : > { %p468_p1 = scmp.eq.s32.totalorder %s467_s27, 0  ;;  %p481_p2 = scmp.eq.s32.totalorder %s5896_s2, 1 }
  0x10   : > { %p486_p3 = scmp.ne.s32.totalorder %s5752_s22, %s5748_s1  ;;  %p487_p4 = scmp.eq.s32.totalorder %s4426_s25, 1 }
  0x11   : > { %s5911_s28 = scalar_select %p468_p1, %s5756_s23, %s470_s26  }
  0x12   : > { %p5913_p5 = por %p481_p2, %p480_p0  ;;  %p5917_p6 = por %p487_p4, %p486_p3 }
  0x13   : > { %7106 = sst [smem:[#allocation7_spill]] %s5911_s28  ;;  %p4429_p7 = scmp.ge.s32.totalorder %s5760_s24, 1 }
  0x14   : > { %p573_p8 = scmp.lt.s32.totalorder %s5760_s24, 3 }
  0x16   : > { %p574_p9 = pnand %p4429_p7, %p573_p8 }
  0x17   : > { %s7109_s8 = sld [smem:[#allocation14_spill]] (!%p574_p9)  ;;  %v5762_v3 = vmov (!%p574_p9), 0.0|0.0   ;;  %vm5763_vm0 = vmmov (!%p574_p9), 0   ;;  %v5764_v6 = vmov (!%p574_p9), 0.0   ;;  %p634_p10 = scmp.lt.s32.totalorder (!%p574_p9), %s5896_s2, 1  ;;  %vm680_vm1 = vcmask (!%p574_p9), 261120  }
  0x18   : > { %577 = sbr.rel (%p574_p9) target bundleno = 1815 (0x717), region = 100  ;;  %5288 = vmatprep.subr.bf16.mxu1 (!%p574_p9), %v5762_v3  ;;  %4917 = vmatprep.mubr.msk.f32.mxu1 (!%p574_p9), %vm5763_vm0, %v5764_v6  ;;  %s7110_s21 = sld [smem:[#allocation12_spill]] (!%p574_p9)  ;;  %vm1227_vm2 = vsmask.f32 (!%p574_p9), 4352  ;;  %vm1267_vm3 = vcmask (!%p574_p9), 1044480   ;;  %vm1505_vm5 = vcmask (!%p574_p9), 1043456  }
  0x19   : > { %5300 = vmatprep.subr.bf16.mxu0 (!%p574_p9), %v5762_v3  ;;  %4939 = vmatprep.mubr.msk.f32.mxu0 (!%p574_p9), %vm5763_vm0, %v5764_v6  ;;  %s7111_s23 = sld [smem:[#allocation9_spill]] (!%p574_p9)  ;;  %s7113_s5 = sld [smem:[#allocation13_spill]] (!%p574_p9)  ;;  %vm6203_vm4 = vmand (!%p574_p9), %vm1267_vm3, %vm1227_vm2  ;;  %vm2089_vm6 = vsmask.f32 (!%p574_p9), 7424  ;;  %vm1618_vm7 = vsmask.f32 (!%p574_p9), 3328 }
  0x1a   : > { %vm6311_vm8 = vmand (!%p574_p9), %vm1505_vm5, %vm1618_vm7  ;;  %vm1866_vm9 = vsmask.f32 (!%p574_p9), 256  ;;  %vm1882_vm10 = vcmask (!%p574_p9), 1040384   ;;  %vm2105_vm12 = vcmask (!%p574_p9), 1047552   ;;  %vm2538_vm14 = vcmask (!%p574_p9), 523264   ;;  %s631_s27 = sand.u32 (!%p574_p9), 1, %s5752_s22  }
  0x1b   : > { %vm6368_vm11 = vmand (!%p574_p9), %vm1882_vm10, %vm1866_vm9  ;;  %vm4332_vm15 = vcmask (!%p574_p9), 519168  }
  0x1c   : > { %vm6435_vm13 = vmand (!%p574_p9), %vm2105_vm12, %vm2089_vm6 }
  0x1d   : > { %v675_v0 = vld [vmem:[%s7109_s8] sm:$0xff] (!%p574_p9)  ;;  %v676_v1 = vld [vmem:[%s7109_s8 + $0x8] sm:$0xff] (!%p574_p9)  ;;  %v677_v2 = vld [vmem:[%s7109_s8 + $0x10] sm:$0xff] (!%p574_p9) }
  0x1e   : > { %v5289_v4 = vpack.c.bf16 (!%p574_p9), %v676_v1, %v675_v0  ;;  %v678_v5 = vld [vmem:[%s7109_s8 + $0x18] sm:$0xff] (!%p574_p9)  ;;  %v756_v7 = vld [vmem:[%s7110_s21] sm:$0xff] (!%p574_p9)  ;;  %v757_v8 = vld [vmem:[%s7110_s21 + $0x8] sm:$0xff] (!%p574_p9) }
  0x1f   : > { %v5945_v9 = vpack.c.bf16 %v757_v8, %v756_v7  ;;  %v758_v10 = vld [vmem:[%s7110_s21 + $0x10] sm:$0xff]  ;;  %v759_v11 = vld [vmem:[%s7110_s21 + $0x18] sm:$0xff]  ;;  %v5292_v12 = vpack.c.bf16 %v678_v5, %v677_v2  ;;  %s635_s30 = scalar_select %p634_p10, %s5896_s2, 1 }
  0x20   : > { %5290 = vmatpush3.bf16.msra.mxu1 %v5289_v4  ;;  %v5959_v13 = vpack.c.bf16 %v759_v11, %v758_v10  ;;  %s7112_s21 = sld [smem:[#allocation8_spill]] }
  0x21   : > { %5291 = vmatprep.subr.bf16.mxu1 %v5762_v3  ;;  %5302 = vmatpush3.bf16.msra.mxu0 %v5945_v9  ;;  %s4714_s0 = sshll.u32 %s635_s30, 6  ;;  %s641_s28 = scalar_lea.vmem %s7111_s23, %s635_s30 }
  0x22   : > { %5303 = vmatprep.subr.bf16.mxu0 %v5762_v3  ;;  %v5970_v14 = vld [vmem:[%s641_s28] sm:$0x1]  ;;  %s5767_s28 = smov [#allocation2]  }
  0x23   : > { %v4433_v18 = vmul.f32 -1.442695, %v5970_v14  ;;  %s5702_s8 = sshll.u32 %s5767_s28, 4  ;;  %s5703_s8 = int_to_ptr.vmem [resolvable:$false] %s5702_s8 }
  0x24   : > { %5293 = vmatpush3.bf16.msra.mxu1 %v5292_v12 }
  0x25   : > { %5294 = vmatprep.subr.bf16.mxu1 %v5762_v3  ;;  %5305 = vmatpush3.bf16.msra.mxu0 %v5959_v13  ;;  %5618 = vpow2.f32 %v4433_v18 }
  0x26   : > { %s5968_s3 = scalar_lea.vmem %s7112_s21, %s4714_s0  ;;  %5312 = vmatprep.subr.bf16.mxu0 %v5762_v3  ;;  %s7114_s21 = sld [smem:[#allocation10_spill]] }
  0x27   : > { %v5973_v15 = vld [vmem:[%s5968_s3] sm:$0xff]  ;;  %v5976_v16 = vld [vmem:[%s5968_s3 + $0x8] sm:$0xff]  ;;  %v5979_v17 = vld [vmem:[%s5968_s3 + $0x10] sm:$0xff]  ;;  %s7115_s0 = sld [smem:[#allocation11_spill]] }
  0x28   : > { %v5984_v19 = vld [vmem:[%s5968_s3 + $0x18] sm:$0xff]  ;;  %v5988_v20 = vld [vmem:[%s5968_s3 + $0x20] sm:$0xff]  ;;  %v764_v21 = vsel %vm680_vm1, %v5973_v15, 0.0  ;;  %v765_v22 = vsel %vm680_vm1, %v5976_v16, 0.0  ;;  %v767_v23 = vsel %vm680_vm1, %v5979_v17, 0.0  ;;  %v785_v24 = vmul.f32 %v5973_v15, %v5973_v15  ;;  %v5999_v25 = vld [vmem:[%s5968_s3 + $0x28] sm:$0xff] }
  0x29   : > { %v766_v26 = vadd.f32 %v765_v22, %v764_v21  ;;  %v6003_v27 = vld [vmem:[%s5968_s3 + $0x30] sm:$0xff]  ;;  %v6006_v28 = vld [vmem:[%s5968_s3 + $0x38] sm:$0xff]  ;;  %v769_v29 = vsel %vm680_vm1, %v5984_v19, 0.0  ;;  %v786_v30 = vmul.f32 %v5976_v16, %v5976_v16  ;;  %v787_v32 = vmul.f32 %v5979_v17, %v5979_v17 }
  0x2a   : > { %v788_v33 = vmul.f32 %v5984_v19, %v5984_v19  ;;  %v789_v34 = vmul.f32 %v5988_v20, %v5988_v20  ;;  %v771_v35 = vsel %vm680_vm1, %v5988_v20, 0.0  ;;  %v790_v36 = vmul.f32 %v5999_v25, %v5999_v25 }
  0x2b   : > { %v768_v31 = vadd.f32 %v767_v23, %v766_v26  ;;  %v793_v37 = vsel %vm680_vm1, %v785_v24, 0.0  ;;  %v773_v39 = vsel %vm680_vm1, %v5999_v25, 0.0  ;;  %v794_v40 = vsel %vm680_vm1, %v786_v30, 0.0  ;;  %v762_v24 = vld [vmem:[%s7113_s5 + $0x10] sm:$0xff]  ;;  %v763_v26 = vld [vmem:[%s7113_s5 + $0x18] sm:$0xff] }
  0x2c   : > { %v796_v41 = vsel %vm680_vm1, %v787_v32, 0.0  ;;  %v775_v42 = vsel %vm680_vm1, %v6003_v27, 0.0  ;;  %v777_v43 = vsel %vm680_vm1, %v6006_v28, 0.0  ;;  %v795_v44 = vadd.f32 %v794_v40, %v793_v37  ;;  %v653_v30 = vld [vmem:[%s7089_s18 + $0x8] sm:$0xf] }
  0x2d   : > { %v770_v38 = vadd.f32 %v769_v29, %v768_v31  ;;  %v798_v45 = vsel %vm680_vm1, %v788_v33, 0.0  ;;  %v800_v47 = vsel %vm680_vm1, %v789_v34, 0.0  ;;  %v802_v48 = vsel %vm680_vm1, %v790_v36, 0.0  ;;  %v651_v31 = vld [vmem:[%s7089_s18] sm:$0xf] }
  0x2e   : > { %v791_v49 = vmul.f32 %v6003_v27, %v6003_v27  ;;  %v797_v50 = vadd.f32 %v796_v41, %v795_v44  ;;  %v792_v55 = vmul.f32 %v6006_v28, %v6006_v28  ;;  %v5310_v29 = vpack.c.bf16 %v763_v26, %v762_v24  ;;  %v654_v33 = vld [vmem:[%s7089_s18 + $0xc] sm:$0xf]  ;;  %v652_v34 = vld [vmem:[%s7089_s18 + $0x4] sm:$0xf]  ;;  %v655_v36 = vld [vmem:[%s7089_s18 + $0x10] sm:$0xf] }
  0x2f   : > { %v772_v46 = vadd.f32 %v771_v35, %v770_v38  ;;  %v5619_v53 = vpop.eup %5618  ;;  %v5765_v32 = vmov 0   ;;  %v656_v35 = vld [vmem:[%s7089_s18 + $0x14] sm:$0xf]  ;;  %v658_v37 = vld [vmem:[%s7089_s18 + $0x1c] sm:$0xf] }
  0x30   : > { %v799_v52 = vadd.f32 %v798_v45, %v797_v50  ;;  %v671_v56 = vadd.f32 1.0, %v5619_v53  ;;  %v804_v58 = vsel %vm680_vm1, %v791_v49, 0.0  ;;  %v806_v62 = vsel %vm680_vm1, %v792_v55, 0.0  ;;  %5561 = vset.pattern.permute.xlu1 %v5765_v32  ;;  %5560 = vset.pattern.permute.xlu0 %v5765_v32  ;;  %v657_v38 = vld [vmem:[%s7089_s18 + $0x18] sm:$0xf] }
  0x31   : > { %v774_v51 = vadd.f32 %v773_v39, %v772_v46  ;;  %1296 = vperm.xlu1 %5561, %v653_v30   ;;  %1272 = vperm.xlu0 %5560, %v651_v31   ;;  %v660_v39 = vld [vmem:[%s7090_s19 + $0x4] sm:$0xf]  ;;  %v659_v40 = vld [vmem:[%s7090_s19] sm:$0xf]  ;;  %v662_v41 = vld [vmem:[%s7090_s19 + $0xc] sm:$0xf] }
  0x32   : > { %v801_v57 = vadd.f32 %v800_v47, %v799_v52  ;;  %5620 = vrcp.f32 %v671_v56  ;;  %v663_v44 = vld [vmem:[%s7090_s19 + $0x10] sm:$0xf]  ;;  %v666_v45 = vld [vmem:[%s7090_s19 + $0x1c] sm:$0xf]  ;;  %v665_v46 = vld [vmem:[%s7090_s19 + $0x18] sm:$0xf] }
  0x33   : > { %v776_v54 = vadd.f32 %v775_v42, %v774_v51  ;;  %v661_v42 = vld [vmem:[%s7090_s19 + $0x8] sm:$0xf] }
  0x34   : > { %v803_v60 = vadd.f32 %v802_v48, %v801_v57 }
  0x35   : > { %v778_v59 = vadd.f32 %v777_v43, %v776_v54  ;;  %1308 = vperm.xlu1 %5561, %v654_v33   ;;  %1284 = vperm.xlu0 %5560, %v652_v34   ;;  %v664_v43 = vld [vmem:[%s7090_s19 + $0x14] sm:$0xf] }
  0x36   : > { %v805_v63 = vadd.f32 %v804_v58, %v803_v60  ;;  %v5563_v60 = vld [vmem:[%s7077_s6 + $0x8] sm:$0xff]  }
  0x37   : > { %v779_v61 = vrot.slane %v778_v59, 4 }
  0x38   : > { %v807_v1 = vadd.f32 %v806_v62, %v805_v63 }
  0x39   : > { %v780_v0 = vadd.f32 %v779_v61, %v778_v59  ;;  %1332 = vperm.xlu1 %5561, %v656_v35   ;;  %1320 = vperm.xlu0 %5560, %v655_v36   ;;  %v5562_v59 = vld [vmem:[%s7077_s6] sm:$0xff]   ;;  %v6132_v61 = vld [vmem:[%s7077_s6 + $0x10] sm:$0xff]  }
  0x3a   : > { %v808_v4 = vrot.slane %v807_v1, 4 }
  0x3b   : > { %v781_v2 = vrot.slane %v780_v0, 2 }
  0x3c   : > { %v809_v7 = vadd.f32 %v808_v4, %v807_v1  ;;  %v5621_v8 = vpop.eup %5620 }
  0x3d   : > { %v782_v5 = vadd.f32 %v781_v2, %v780_v0  ;;  %v674_v12 = vmul.f32 %v5621_v8, %v5970_v14  ;;  %1356 = vperm.xlu1 %5561, %v658_v37   ;;  %1344 = vperm.xlu0 %5560, %v657_v38   ;;  %v1113_v0 = vlaneseq }
  0x3e   : > { %v810_v11 = vrot.slane %v809_v7, 2 }
  0x3f   : > { %v783_v10 = vrot.slane %v782_v5, 1  ;;  %4918 = vmatmul.mubr.msk.f32.vlgmr.msra.gmra.mrb[0].mxu1 %vm680_vm1, %v674_v12  ;;  %v6135_v1 = vshrl.u32 %v1113_v0, 7 }
  0x40   : > { %v811_v18 = vadd.f32 %v810_v11, %v809_v7  ;;  %5296 = vmatpush3.bf16.msra.mxu1 %v5945_v9  ;;  %4928 = vmatprep.mubr.msk.f32.mxu1 %vm5763_vm0, %v5764_v6  ;;  %v760_v9 = vld [vmem:[%s7113_s5] sm:$0xff] }
  0x41   : > { %5297 = vmatprep.subr.bf16.mxu1 %v5762_v3  ;;  %v784_v23 = vadd.f32 %v783_v10, %v782_v5  ;;  %1654 = vperm.xlu1 %5561, %v660_v39   ;;  %v6138_v2 = vsub.s32 0, %v6135_v1 }
  0x42   : > { %v812_v21 = vrot.slane %v811_v18, 1  ;;  %1642 = vperm.xlu0 %5560, %v659_v40  }
  0x44   : > { %v813_v22 = vadd.f32 %v812_v21, %v811_v18  ;;  %5299 = vmatpush3.bf16.msra.mxu1 %v5959_v13  ;;  %v761_v13 = vld [vmem:[%s7113_s5 + $0x8] sm:$0xff]  ;;  %s4723_s5 = sshll.u32 %s5896_s2, 9  ;;  %s7030_s2 = scalar_lea.sflag [#allocation3], %s631_s27 }
  0x45   : > { %5306 = vmatprep.subr.bf16.mxu1 %v5762_v3  ;;  %v5307_v14 = vpack.c.bf16 %v761_v13, %v760_v9  ;;  %1678 = vperm.xlu1 %5561, %v662_v41  }
  0x46   : > { %4940 = vmatmul.mubr.msk.f32.vlgmr.msra.gmra.mrb[0].mxu0 %vm680_vm1, %v813_v22  ;;  %1666 = vperm.xlu0 %5560, %v661_v42  }
  0x47   : > { %4961 = vmatprep.mubr.msk.f32.mxu0 %vm5763_vm0, %v5764_v6  ;;  %4929 = vmatmul.mubr.msk.f32.vlgmr.msra.gmra.mrb[2].mxu1 %vm680_vm1, %v784_v23 }
  0x48   : > { %4950 = vmatprep.mubr.msk.f32.mxu1 %vm5763_vm0, %v5764_v6  ;;  %5308 = vmatpush3.bf16.msra.mxu1 %v5307_v14 }
  0x49   : > { %5314 = vmatpush3.bf16.msra.mxu0 %v5307_v14  ;;  %5309 = vmatprep.subr.bf16.mxu1 %v5762_v3 }
  0x4a   : > { %5315 = vmatprep.subr.bf16.mxu0 %v5762_v3  ;;  %1702 = vperm.xlu1 %5561, %v664_v43  }
  0x4b   : > { %1690 = vperm.xlu0 %5560, %v663_v44  }
  0x4c   : > { %5311 = vmatpush3.bf16.msra.mxu1 %v5310_v29 }
  0x4d   : > { %5317 = vmatpush3.bf16.msra.mxu0 %v5310_v29  ;;  %4964 = vmatprep.subr.bf16.mxu1 %v5562_v59 }
  0x4e   : > { %5342 = vmatprep.subr.bf16.mxu0 %v5762_v3  ;;  %1726 = vperm.xlu1 %5561, %v666_v45  }
  0x4f   : > { %1714 = vperm.xlu0 %5560, %v665_v46  }
 0x112   : > { %v6117_v47 = vpop.f32.mrb[0].mxu1 }
 0x113   : > { %v4919_v48 = vpop.f32.mrb[1].mxu1 }
 0x119   : > { %v956_v49 = vpop.f32.mrb[0].mxu0 }
 0x11a   : > { %v4941_v50 = vpop.f32.mrb[1].mxu0  ;;  %v883_v51 = vpop.f32.mrb[2].mxu1  ;;  %v962_v54 = vmul.f32 0.015625, %v956_v49 }
 0x11b   : > { %v961_v52 = vmul.f32 0.015625, %v883_v51  ;;  %v4930_v53 = vpop.f32.mrb[3].mxu1 }
 0x11d   : > { %v963_v55 = vmul.f32 %v961_v52, %v961_v52  ;;  %4951 = vmatmul.mubr.msk.f32.vlgmr.msra.gmra.mrb[4].mxu1 %vm680_vm1, %v961_v52 }
 0x11e   : > { %4965 = vmatpush3.bf16.msra.mxu1 %v5562_v59 }
 0x11f   : > { %v964_v56 = vsub.f32 %v962_v54, %v963_v55  ;;  %4966 = vmatprep.subr.bf16.mxu1 %v5563_v60 }
 0x121   : > { %v965_v57 = vadd.f32 1e-05, %v964_v56 }
 0x122   : > { %4967 = vmatpush3.bf16.msra.mxu1 %v5563_v60 }
 0x123   : > { %5622 = vrsqrt.f32 %v965_v57  ;;  %4976 = vmatprep.subr.bf16.mxu1 %v6132_v61 }
 0x12d   : > { %v5623_v58 = vpop.eup %5622 }
 0x12e   : > { %4962 = vmatmul.mubr.msk.f32.vlgmr.msra.gmra.mrb[2].mxu0 %vm680_vm1, %v5623_v58 }
 0x12f   : > { %5118 = vmatprep.mubr.msk.f32.mxu0 %vm5763_vm0, %v5764_v6 }
 0x1f0   : > { %v1036_v62 = vpop.f32.mrb[4].mxu1 }
 0x1f1   : > { %v4952_v63 = vpop.f32.mrb[5].mxu1  ;;  %v1116_v4 = vrot.slane %v1036_v62, %v6138_v2 }
 0x1f3   : > { %v1117_v5 = vsub.f32 %v5973_v15, %v1116_v4  ;;  %v1118_v8 = vsub.f32 %v5976_v16, %v1116_v4  ;;  %v1119_v10 = vsub.f32 %v5979_v17, %v1116_v4  ;;  %v1120_v11 = vsub.f32 %v5984_v19, %v1116_v4  ;;  %v4439_v15 = vld [vmem:[%s7114_s21] ss:$0 sm:$0xff]  ;;  %s4430_s21 = sshll.u32 %s631_s27, 5 }
 0x1f4   : > { %v1121_v21 = vsub.f32 %v5988_v20, %v1116_v4  ;;  %v1122_v22 = vsub.f32 %v5999_v25, %v1116_v4  ;;  %v1123_v23 = vsub.f32 %v6003_v27, %v1116_v4  ;;  %v1124_v9 = vsub.f32 %v6006_v28, %v1116_v4  ;;  %v4440_v19 = vld [vmem:[%s7115_s0] ss:$0 sm:$0xff]  ;;  %s633_s30 = scalar_lea.vmem [#allocation2], %s4430_s21  ;;  %s5704_s21 = scalar_lea.vmem %s5703_s8, 1024 }
 0x1f5   : > { %v5766_v4 = vmov 839922192   ;;  %s4355_s0 = sshll.u32 %s633_s30, 4  ;;  %s7023_s0 = int_to_ptr.vmem [resolvable:$true] %s4355_s0 }
 0x1f6   : > { %s5698_s23 = scalar_lea.vmem %s7023_s0, 512  ;;  %p5705_p0 = scmp.lt.s32.totalorder %s7023_s0, %s5703_s8 }
 0x1f7   : > { %p5699_p11 = scmp.ne.s32.totalorder %s7023_s0, %s5698_s23  ;;  %p5706_p1 = scmp.lt.s32.totalorder %s5704_s21, %s5698_s23 }
 0x1f9   : > { %p5700_p12 = pnand %p5699_p11, %p5913_p5  ;;  %p5707_p2 = por %p5706_p1, %p5705_p0 }
 0x1fb   : > { %p5701_p13 = pneg %p5700_p12 }
 0x1fd   : > { %p5708_p3 = pnand %p5707_p2, %p5701_p13 }
 0x201   : > { %v1109_v7 = vpop.f32.mrb[2].mxu0 }
 0x202   : > { %v1128_v12 = vrot.slane %v1109_v7, %v6138_v2  ;;  %v4963_v18 = vpop.f32.mrb[3].mxu0 }
 0x203   : > { %v1297_v18 = vpop.permute.xlu1 %1296 }
 0x204   : > { %v1129_v16 = vmul.f32 %v1128_v12, %v1117_v5  ;;  %v1130_v13 = vmul.f32 %v1128_v12, %v1118_v8  ;;  %v1131_v17 = vmul.f32 %v1128_v12, %v1119_v10  ;;  %v1132_v14 = vmul.f32 %v1128_v12, %v1120_v11 }
 0x205   : > { %v1133_v24 = vmul.f32 %v1128_v12, %v1121_v21  ;;  %v1134_v20 = vmul.f32 %v1128_v12, %v1122_v22  ;;  %v1135_v26 = vmul.f32 %v1128_v12, %v1123_v23  ;;  %v1136_v25 = vmul.f32 %v1128_v12, %v1124_v9  ;;  %v1273_v21 = vpop.permute.xlu0 %1272 }
 0x206   : > { %v1145_v29 = vmul.f32 %v4439_v15, %v1131_v17  ;;  %v1146_v27 = vmul.f32 %v4439_v15, %v1132_v14  ;;  %v1143_v30 = vmul.f32 %v4439_v15, %v1129_v16  ;;  %v1144_v28 = vmul.f32 %v4439_v15, %v1130_v13 }
 0x207   : > { %v1147_v31 = vmul.f32 %v4439_v15, %v1133_v24  ;;  %v1148_v32 = vmul.f32 %v4439_v15, %v1134_v20  ;;  %v1149_v33 = vmul.f32 %v4439_v15, %v1135_v26  ;;  %v1150_v34 = vmul.f32 %v4439_v15, %v1136_v25  ;;  %v1309_v24 = vpop.permute.xlu1 %1308 }
 0x208   : > { %v1159_v35 = vadd.f32 %v4440_v19, %v1145_v29  ;;  %v1160_v36 = vadd.f32 %v4440_v19, %v1146_v27  ;;  %v1157_v37 = vadd.f32 %v4440_v19, %v1143_v30  ;;  %v1158_v38 = vadd.f32 %v4440_v19, %v1144_v28 }
 0x209   : > { %v6156_v39 = vadd.f32 %v4440_v19, %v1147_v31  ;;  %v6158_v40 = vadd.f32 %v4440_v19, %v1148_v32  ;;  %v6160_v44 = vadd.f32 %v4440_v19, %v1149_v33  ;;  %v6162_v46 = vadd.f32 %v4440_v19, %v1150_v34  ;;  %v1285_v28 = vpop.permute.xlu0 %1284 }
 0x20a   : > { %v4443_v41 = vmul.f32 -1.442695, %v1159_v35  ;;  %v4444_v42 = vmul.f32 -1.442695, %v1160_v36  ;;  %v4441_v43 = vmul.f32 -1.442695, %v1157_v37  ;;  %v1276_v5 = vunpack.c.l.s4 %v5766_v4 }
 0x20b   : > { %v4442_v45 = vmul.f32 -1.442695, %v1158_v38  ;;  %v4445_v48 = vmul.f32 -1.442695, %v6156_v39  ;;  %v4446_v49 = vmul.f32 -1.442695, %v6158_v40 }
 0x20c   : > { %5624 = vpow2.f32 %v4443_v41  ;;  %v4447_v50 = vmul.f32 -1.442695, %v6160_v44  ;;  %v4448_v51 = vmul.f32 -1.442695, %v6162_v46  ;;  %v1277_v12 = vunpack.c.0.s8 %v1276_v5 }
 0x20d   : > { %5626 = vpow2.f32 %v4444_v42 }
 0x20e   : > { %5628 = vpow2.f32 %v4441_v43  ;;  %v6169_v9 = vsub.s32 %v1277_v12, %v6135_v1 }
 0x20f   : > { %5630 = vpow2.f32 %v4442_v45 }
 0x210   : > { %5632 = vpow2.f32 %v4445_v48  ;;  %v1305_v29 = vrot.slane %v1297_v18, %v6169_v9  ;;  %v1281_v27 = vrot.slane %v1273_v21, %v6169_v9  ;;  %v1317_v30 = vrot.slane %v1309_v24, %v6169_v9  ;;  %v1333_v48 = vpop.permute.xlu1 %1332  ;;  %v5565_v18 = vld [vmem:[%s7077_s6 + $0x18] sm:$0xff]  }
 0x211   : > { %5634 = vpow2.f32 %v4446_v49 }
 0x212   : > { %5636 = vpow2.f32 %v4447_v50 }
 0x213   : > { %5638 = vpow2.f32 %v4448_v51  ;;  %v1341_v51 = vrot.slane %v1333_v48, %v6169_v9 }
 0x216   : > { %v5625_v52 = vpop.eup %5624 }
 0x217   : > { %v5627_v53 = vpop.eup %5626  ;;  %v1191_v54 = vadd.f32 1.0, %v5625_v52  ;;  %v1321_v52 = vpop.permute.xlu0 %1320 }
 0x218   : > { %v5629_v55 = vpop.eup %5628  ;;  %v1192_v56 = vadd.f32 1.0, %v5627_v53  ;;  %v5614_v53 = vld [vmem:[%s7085_s14 + $0x100] sm:$0xff]  }
 0x219   : > { %v5631_v57 = vpop.eup %5630  ;;  %5640 = vrcp.f32 %v1191_v54  ;;  %v1189_v58 = vadd.f32 1.0, %v5629_v55 }
 0x21a   : > { %v5633_v59 = vpop.eup %5632  ;;  %5642 = vrcp.f32 %v1192_v56  ;;  %v1190_v60 = vadd.f32 1.0, %v5631_v57  ;;  %v6215_v56 = vcombine.low %v1305_v29, %v1317_v30 }
 0x21b   : > { %v5635_v62 = vpop.eup %5634  ;;  %5644 = vrcp.f32 %v1189_v58  ;;  %v1193_v63 = vadd.f32 1.0, %v5633_v59  ;;  %v1329_v58 = vrot.slane %v1321_v52, %v6169_v9  ;;  %v5567_v52 = vld [vmem:[%s7077_s6 + $0x28] sm:$0xff]  }
 0x21c   : > { %v5637_v0 = vpop.eup %5636  ;;  %5646 = vrcp.f32 %v1190_v60  ;;  %v1194_v7 = vadd.f32 1.0, %v5635_v62 }
 0x21d   : > { %v5639_v8 = vpop.eup %5638  ;;  %5648 = vrcp.f32 %v1193_v63  ;;  %v1195_v10 = vadd.f32 1.0, %v5637_v0  ;;  %v6237_v12 = vcombine.low %v1329_v58, %v1341_v51 }
 0x21e   : > { %5650 = vrcp.f32 %v1194_v7  ;;  %v1196_v11 = vadd.f32 1.0, %v5639_v8 }
 0x21f   : > { %5652 = vrcp.f32 %v1195_v10 }
 0x220   : > { %5654 = vrcp.f32 %v1196_v11 }
 0x223   : > { %v5641_v22 = vpop.eup %5640 }
 0x224   : > { %v5643_v23 = vpop.eup %5642  ;;  %v1215_v15 = vmul.f32 %v5641_v22, %v1159_v35  ;;  %v1357_v22 = vpop.permute.xlu1 %1356 }
 0x225   : > { %v5645_v16 = vpop.eup %5644  ;;  %v1216_v13 = vmul.f32 %v5643_v23, %v1160_v36  ;;  %v1345_v23 = vpop.permute.xlu0 %1344 }
 0x226   : > { %v5647_v17 = vpop.eup %5646  ;;  %v1213_v14 = vmul.f32 %v5645_v16, %v1157_v37  ;;  %v1293_v37 = vrot.slane %v1285_v28, %v6169_v9  ;;  %v1365_v16 = vrot.slane %v1357_v22, %v6169_v9 }
 0x227   : > { %v5649_v19 = vpop.eup %5648  ;;  %v1214_v20 = vmul.f32 %v5647_v17, %v1158_v38  ;;  %v6171_v26 = vpack.c.bf16 %v1216_v13, %v1215_v15  ;;  %v1353_v13 = vrot.slane %v1345_v23, %v6169_v9 }
 0x228   : > { %v5651_v25 = vpop.eup %5650  ;;  %v1217_v1 = vmul.f32 %v5649_v19, %v6156_v39  ;;  %v6217_v57 = vcombine.low %v1281_v27, %v1293_v37  ;;  %v5566_v19 = vld [vmem:[%s7077_s6 + $0x20] sm:$0xff]  }
 0x229   : > { %v5653_v31 = vpop.eup %5652  ;;  %v6177_v32 = vpack.c.bf16 %v1214_v20, %v1213_v14  ;;  %v6180_v33 = vshrl.u32 %v6171_v26, 16  ;;  %v6183_v34 = vshll.u32 %v6171_v26, 16  ;;  %v1218_v35 = vmul.f32 %v5651_v25, %v6158_v40 }
 0x22a   : > { %v5655_v36 = vpop.eup %5654  ;;  %v1219_v38 = vmul.f32 %v5653_v31, %v6160_v44  ;;  %v6264_v25 = vcombine.low %v1353_v13, %v1365_v16 }
 0x22b   : > { %v6189_v39 = vshrl.u32 %v6177_v32, 16  ;;  %v6192_v41 = vshll.u32 %v6177_v32, 16  ;;  %v1239_v42 = vrot.slane %v6180_v33, 3  ;;  %v1242_v43 = vrot.slane %v6183_v34, 4 }
 0x22c   : > { %v6196_v45 = vpack.c.bf16 %v1218_v35, %v1217_v1  ;;  %v1220_v40 = vmul.f32 %v5655_v36, %v6162_v46  ;;  %v1506_v20 = vrot.slane %v6177_v32, 4  ;;  %v2092_v27 = vrot.slane %v6183_v34, 1 }
 0x22d   : > { %v1231_v49 = vrot.slane %v6189_v39, 3  ;;  %v1234_v50 = vrot.slane %v6192_v41, 4  ;;  %v1243_v44 = vor.u32 %v1242_v43, %v1239_v42  ;;  %v2090_v29 = vrot.slane %v6192_v41, 1  ;;  %v1643_v42 = vpop.permute.xlu0 %1642 }
 0x22e   : > { %v6208_v54 = vshrl.u32 %v6196_v45, 16  ;;  %v6211_v55 = vshll.u32 %v6196_v45, 16  ;;  %v6213_v46 = vpack.c.bf16 %v1220_v40, %v1219_v38  ;;  %v1516_v30 = vsel %vm1505_vm5, 0, %v1506_v20  ;;  %v1655_v38 = vpop.permute.xlu1 %1654 }
 0x22f   : > { %v1235_v59 = vor.u32 %v1234_v50, %v1231_v49  ;;  %v2091_v28 = vor.u32 %v2090_v29, %v6189_v39  ;;  %v2094_v1 = vor.u32 %v2092_v27, %v6180_v33  ;;  %v1507_v43 = vrot.slane %v6171_v26, 4 }
 0x230   : > { %v1248_v60 = vrot.slane %v6208_v54, 3  ;;  %v1251_v62 = vrot.slane %v6211_v55, 4  ;;  %v6223_v63 = vshrl.u32 %v6213_v46, 16  ;;  %v6226_v0 = vshll.u32 %v6213_v46, 16 }
 0x231   : > { %v1269_v4 = vsel %vm6203_vm4, 0, %v1235_v59  ;;  %v6231_v5 = vsel %vm1227_vm2, %v1235_v59, %v1243_v44  ;;  %v2095_v31 = vrot.slane %v6211_v55, 1  ;;  %v6278_v36 = vsel %vm2089_vm6, %v2091_v28, %v2092_v27 }
 0x232   : > { %v1390_v7 = vmul.bf16 %v6217_v57, %v1269_v4  ;;  %v1391_v8 = vmul.bf16 %v6215_v56, %v6231_v5  ;;  %v1252_v10 = vor.u32 %v1251_v62, %v1248_v60  ;;  %v1257_v11 = vrot.slane %v6223_v63, 3 }
 0x233   : > { %v1260_v21 = vrot.slane %v6226_v0, 4  ;;  %v2098_v35 = vrot.slane %v6226_v0, 1  ;;  %v6281_v37 = vsel %vm2089_vm6, %v2094_v1, %v2095_v31  ;;  %v2097_v40 = vor.u32 %v2095_v31, %v6208_v54 }
 0x234   : > { %4968 = vmatprep.mubr.msk.bf16.mxu1 %vm680_vm1, %v1390_v7  ;;  %v6245_v15 = vsel %vm1227_vm2, %v1243_v44, %v1252_v10  ;;  %v1509_v49 = vrot.slane %v6196_v45, 4  ;;  %v1619_v50 = vrot.slane %v6189_v39, 4  ;;  %v1620_v44 = vrot.slane %v6192_v41, 5  ;;  %v1679_v7 = vpop.permute.xlu1 %1678 }
 0x235   : > { %4969 = vmatmul.mubr.msk.bf16.vlgmr.msra.gmra.mrb[8].mxu1 %vm680_vm1, %v1391_v8  ;;  %v1392_v17 = vmul.bf16 %v6237_v12, %v6245_v15  ;;  %v6252_v14 = vor.u32 %v1260_v21, %v1257_v11  ;;  %v6286_v48 = vor.u32 %v2098_v35, %v6223_v63  ;;  %v6292_v51 = vsel %vm2089_vm6, %v2097_v40, %v2098_v35  ;;  %v1667_v8 = vpop.permute.xlu0 %1666  ;;  %v5568_v11 = vld [vmem:[%s7077_s6 + $0x30] sm:$0xff]  }
 0x236   : > { %4977 = vmatpush3.bf16.msra.mxu1 %v6132_v61  ;;  %v6298_v58 = vsel %vm1505_vm5, %v1506_v20, %v1507_v43  ;;  %v6303_v59 = vsel %vm1505_vm5, %v1507_v43, %v1509_v49  ;;  %v1621_v60 = vor.u32 %v1620_v44, %v1619_v50  ;;  %v1663_v62 = vrot.slane %v1655_v38, %v6169_v9 }
 0x237   : > { %4972 = vmatprep.mubr.msk.bf16.mxu1 %vm680_vm1, %v1392_v17  ;;  %4978 = vmatprep.subr.bf16.mxu1 %v5565_v18  ;;  %v6261_v24 = vsel %vm1227_vm2, %v1252_v10, %v6252_v14  ;;  %v1651_v4 = vrot.slane %v1643_v42, %v6169_v9  ;;  %v1622_v21 = vrot.slane %v6180_v33, 4  ;;  %v1623_v22 = vrot.slane %v6183_v34, 5 }
 0x238   : > { %v1393_v61 = vmul.bf16 %v6264_v25, %v6261_v24  ;;  %v1639_v23 = vsel %vm6311_vm8, 0, %v1621_v60  ;;  %v1626_v16 = vrot.slane %v6208_v54, 4  ;;  %v1627_v13 = vrot.slane %v6211_v55, 5 }
 0x239   : > { %v6325_v17 = vcombine.low %v1651_v4, %v1663_v62  ;;  %v1691_v20 = vpop.permute.xlu0 %1690  ;;  %v1675_v28 = vrot.slane %v1667_v8, %v6169_v9  ;;  %v1630_v42 = vrot.slane %v6223_v63, 4  ;;  %v1631_v43 = vrot.slane %v6226_v0, 5 }
 0x23a   : > { %4979 = vmatpush3.bf16.msra.mxu1 %v5565_v18  ;;  %v1511_v18 = vrot.slane %v6213_v46, 4  ;;  %v1628_v1 = vor.u32 %v1627_v13, %v1626_v16  ;;  %v1699_v35 = vrot.slane %v1691_v20, %v6169_v9  ;;  %v1867_v50 = vrot.slane %v6189_v39, 7  ;;  %v5570_v16 = vld [vmem:[%s7077_s6 + $0x40] sm:$0xff]  }
 0x23b   : > { %4988 = vmatprep.subr.bf16.mxu1 %v5566_v19  ;;  %v1760_v27 = vmul.bf16 %v6325_v17, %v1639_v23  ;;  %v6360_v8 = vor.u32 %v1631_v43, %v1630_v42  ;;  %v1869_v13 = vrot.slane %v6180_v33, 7  ;;  %v5574_v43 = vld [vmem:[%s7077_s6 + $0x60] sm:$0xff]  }
 0x23c   : > { %v6330_v29 = vsel %vm1505_vm5, %v1509_v49, %v1511_v18 }
 0x23d   : > { %4973 = vmatmul.mubr.msk.bf16.gmra.mrb[12].mxu1 %vm680_vm1, %v1393_v61  ;;  %v1624_v61 = vor.u32 %v1623_v22, %v1622_v21  ;;  %v1715_v62 = vpop.permute.xlu0 %1714  ;;  %v1868_v22 = vor.u32 %v1867_v50, %v6192_v41 }
 0x23e   : > { %4980 = vmatprep.mubr.msk.bf16.mxu1 %vm680_vm1, %v1516_v30  ;;  %v1687_v30 = vrot.slane %v1679_v7, %v6169_v9  ;;  %v1723_v21 = vrot.slane %v1715_v62, %v6169_v9  ;;  %v2216_v62 = vmul.bf16 %v6217_v57, %v6231_v5  ;;  %v5578_v5 = vld [vmem:[%s7077_s6 + $0x80] sm:$0xff]  }
 0x23f   : > { %v6341_v38 = vsel %vm1618_vm7, %v1621_v60, %v1624_v61  ;;  %v6348_v49 = vsel %vm1618_vm7, %v1624_v61, %v1628_v1  ;;  %v5569_v60 = vld [vmem:[%s7077_s6 + $0x38] sm:$0xff]   ;;  %v1870_v61 = vor.u32 %v1869_v13, %v6183_v34  ;;  %v5571_v34 = vld [vmem:[%s7077_s6 + $0x48] sm:$0xff]  }
 0x240   : > { %v6345_v40 = vcombine.low %v1675_v28, %v1687_v30  ;;  %v1875_v28 = vrot.slane %v6223_v63, 7 }
 0x241   : > { %v1871_v30 = vsel %vm1866_vm9, %v1867_v50, %v1870_v61  ;;  %v2534_v61 = vld [vmem:[%s7084_s13] sm:$0xff] }
 0x242   : > { %v1761_v4 = vmul.bf16 %v6345_v40, %v6341_v38 }
 0x245   : > { %4981 = vmatmul.mubr.msk.bf16.vlgmr.msra.gmra.mrb[8].mxu1 %vm680_vm1, %v6298_v58 }
 0x246   : > { %4989 = vmatpush3.bf16.msra.mxu1 %v5566_v19  ;;  %4984 = vmatprep.mubr.msk.bf16.mxu1 %vm680_vm1, %v6303_v59  ;;  %v1703_v19 = vpop.permute.xlu1 %1702 }
 0x247   : > { %4990 = vmatprep.subr.bf16.mxu1 %v5567_v52  ;;  %v1711_v31 = vrot.slane %v1703_v19, %v6169_v9  ;;  %v1872_v19 = vrot.slane %v6208_v54, 7 }
 0x249   : > { %v6351_v44 = vcombine.low %v1699_v35, %v1711_v31  ;;  %v1873_v33 = vor.u32 %v1872_v19, %v6211_v55  ;;  %v1876_v35 = vor.u32 %v1875_v28, %v6226_v0  ;;  %v5572_v55 = vld [vmem:[%s7077_s6 + $0x50] sm:$0xff]   ;;  %v5573_v0 = vld [vmem:[%s7077_s6 + $0x58] sm:$0xff]  }
 0x24a   : > { %4991 = vmatpush3.bf16.msra.mxu1 %v5567_v52  ;;  %v1727_v52 = vpop.permute.xlu1 %1726 }
 0x24b   : > { %5000 = vmatprep.subr.bf16.mxu1 %v5568_v11  ;;  %v1762_v7 = vmul.bf16 %v6351_v44, %v6348_v49  ;;  %v1735_v39 = vrot.slane %v1727_v52, %v6169_v9  ;;  %v6377_v9 = vsel %vm1618_vm7, %v1628_v1, %v6360_v8  ;;  %v1874_v54 = vsel %vm1866_vm9, %v1869_v13, %v1873_v33 }
 0x24c   : > { %v1886_v1 = vmul.bf16 %v6215_v56, %v1871_v30  ;;  %v1887_v31 = vmul.bf16 %v6237_v12, %v1874_v54  ;;  %v1877_v63 = vsel %vm1866_vm9, %v1872_v19, %v1876_v35  ;;  %v2110_v50 = vmul.bf16 %v6351_v44, %v6292_v51  ;;  %v2533_v19 = vld [vmem:[%s7083_s12 + $0x38] sm:$0xff]  ;;  %v679_v30 = vld [vmem:[%s7080_s9] sm:$0x1] }
 0x24d   : > { %4985 = vmatmul.mubr.msk.bf16.gmra.mrb[12].mxu1 %vm680_vm1, %v6330_v29  ;;  %v6380_v41 = vcombine.low %v1723_v21, %v1735_v39  ;;  %v1888_v42 = vmul.bf16 %v6264_v25, %v1877_v63  ;;  %v2107_v52 = vsel %vm6435_vm13, %v6286_v48, 0  ;;  %v2218_v48 = vmul.bf16 %v6237_v12, %v6261_v24  ;;  %v5579_v24 = vld [vmem:[%s7077_s6 + $0x88] sm:$0xff]   ;;  %v2528_v39 = vld [vmem:[%s7083_s12 + $0x10] sm:$0xff]  ;;  %v2529_v21 = vld [vmem:[%s7083_s12 + $0x18] sm:$0xff] }
 0x24e   : > { %4992 = vmatprep.mubr.msk.bf16.mxu1 %vm680_vm1, %v1760_v27  ;;  %v751_v28 = vadd.f32 %v6117_v47, %v679_v30  ;;  %v1221_v54 = vld [vmem:[%s7078_s7] sm:$0x1] }
 0x24f   : > { %v1763_v20 = vmul.bf16 %v6380_v41, %v6377_v9  ;;  %v2111_v51 = vmul.bf16 %v6380_v41, %v2107_v52 }
 0x255   : > { %4993 = vmatmul.mubr.msk.bf16.vlgmr.msra.gmra.mrb[8].mxu1 %vm680_vm1, %v1761_v4  ;;  %v2217_v4 = vmul.bf16 %v6215_v56, %v6245_v15  ;;  %v2215_v15 = vsel %vm6203_vm4, %v6252_v14, 0  ;;  %v2323_v14 = vsel %vm1505_vm5, %v1511_v18, 0 }
 0x256   : > { %5001 = vmatpush3.bf16.msra.mxu1 %v5568_v11  ;;  %4996 = vmatprep.mubr.msk.bf16.mxu1 %vm680_vm1, %v1762_v7  ;;  %v1884_v11 = vsel %vm6368_vm11, 0, %v1868_v22  ;;  %v2219_v7 = vmul.bf16 %v6264_v25, %v2215_v15  ;;  %v6513_v22 = vpack.c.bf16 %v2529_v21, %v2528_v39 }
 0x257   : > { %5002 = vmatprep.subr.bf16.mxu1 %v5569_v60  ;;  %v1885_v27 = vmul.bf16 %v6217_v57, %v1884_v11  ;;  %v2532_v11 = vld [vmem:[%s7083_s12 + $0x30] sm:$0xff] }
 0x25a   : > { %5003 = vmatpush3.bf16.msra.mxu1 %v5569_v60  ;;  %v5577_v60 = vld [vmem:[%s7077_s6 + $0x78] sm:$0xff]  }
 0x25b   : > { %5012 = vmatprep.subr.bf16.mxu1 %v5570_v16 }
 0x25d   : > { %4997 = vmatmul.mubr.msk.bf16.gmra.mrb[12].mxu1 %vm680_vm1, %v1763_v20  ;;  %v6533_v20 = vpack.c.bf16 %v2533_v19, %v2532_v11 }
 0x25e   : > { %5004 = vmatprep.mubr.msk.bf16.mxu1 %vm680_vm1, %v1885_v27  ;;  %v2535_v27 = vld [vmem:[%s7084_s13 + $0x8] sm:$0xff] }
 0x25f   : > { %v6544_v33 = vpack.c.bf16 %v2535_v27, %v2534_v61 }
 0x261   : > { %5344 = vmatpush3.bf16.msra.mxu0 %v6544_v33 }
 0x262   : > { %5345 = vmatprep.subr.bf16.mxu0 %v5762_v3 }
 0x265   : > { %5005 = vmatmul.mubr.msk.bf16.vlgmr.msra.gmra.mrb[8].mxu1 %vm680_vm1, %v1886_v1  ;;  %v1222_v1 = vadd.f32 %v1221_v54, %v751_v28 }
 0x266   : > { %5013 = vmatpush3.bf16.msra.mxu1 %v5570_v16  ;;  %5008 = vmatprep.mubr.msk.bf16.mxu1 %vm680_vm1, %v1887_v31  ;;  %v2530_v16 = vld [vmem:[%s7083_s12 + $0x20] sm:$0xff] }
 0x267   : > { %5014 = vmatprep.subr.bf16.mxu1 %v5571_v34 }
 0x26a   : > { %5015 = vmatpush3.bf16.msra.mxu1 %v5571_v34  ;;  %v1491_v34 = vrot.slane %v1222_v1, %v6138_v2 }
 0x26b   : > { %5024 = vmatprep.subr.bf16.mxu1 %v5572_v55 }
 0x26d   : > { %5009 = vmatmul.mubr.msk.bf16.gmra.mrb[12].mxu1 %vm680_vm1, %v1888_v42 }
 0x26e   : > { %5016 = vmatprep.mubr.msk.bf16.mxu1 %vm680_vm1, %v6177_v32  ;;  %v2108_v32 = vmul.bf16 %v6325_v17, %v6278_v36  ;;  %v5610_v36 = vld [vmem:[%s7085_s14 + $0xe0] sm:$0xff]  }
 0x275   : > { %5017 = vmatmul.mubr.msk.bf16.vlgmr.msra.gmra.mrb[8].mxu1 %vm680_vm1, %v6171_v26  ;;  %v2109_v26 = vmul.bf16 %v6345_v40, %v6281_v37  ;;  %v5576_v37 = vld [vmem:[%s7077_s6 + $0x70] sm:$0xff]  }
 0x276   : > { %5025 = vmatpush3.bf16.msra.mxu1 %v5572_v55  ;;  %5020 = vmatprep.mubr.msk.bf16.mxu1 %vm680_vm1, %v6196_v45  ;;  %v5575_v45 = vld [vmem:[%s7077_s6 + $0x68] sm:$0xff]  }
 0x277   : > { %5026 = vmatprep.subr.bf16.mxu1 %v5573_v0 }
 0x27a   : > { %5027 = vmatpush3.bf16.msra.mxu1 %v5573_v0 }
 0x27b   : > { %5036 = vmatprep.subr.bf16.mxu1 %v5574_v43 }
 0x27d   : > { %5021 = vmatmul.mubr.msk.bf16.gmra.mrb[12].mxu1 %vm680_vm1, %v6213_v46  ;;  %v2417_v46 = vsel %vm6311_vm8, %v6360_v8, 0 }
 0x27e   : > { %5028 = vmatprep.mubr.msk.bf16.mxu1 %vm680_vm1, %v2108_v32  ;;  %v2421_v18 = vmul.bf16 %v6380_v41, %v2417_v46 }
 0x285   : > { %5029 = vmatmul.mubr.msk.bf16.vlgmr.msra.gmra.mrb[8].mxu1 %vm680_vm1, %v2109_v26 }
 0x286   : > { %5037 = vmatpush3.bf16.msra.mxu1 %v5574_v43  ;;  %5032 = vmatprep.mubr.msk.bf16.mxu1 %vm680_vm1, %v2110_v50 }
 0x287   : > { %5038 = vmatprep.subr.bf16.mxu1 %v5575_v45 }
 0x28a   : > { %5039 = vmatpush3.bf16.msra.mxu1 %v5575_v45 }
 0x28b   : > { %5048 = vmatprep.subr.bf16.mxu1 %v5576_v37 }
 0x28d   : > { %5033 = vmatmul.mubr.msk.bf16.gmra.mrb[12].mxu1 %vm680_vm1, %v2111_v51 }
 0x28e   : > { %5040 = vmatprep.mubr.msk.bf16.mxu1 %vm680_vm1, %v2216_v62 }
 0x295   : > { %5041 = vmatmul.mubr.msk.bf16.vlgmr.msra.gmra.mrb[8].mxu1 %vm680_vm1, %v2217_v4 }
 0x296   : > { %5049 = vmatpush3.bf16.msra.mxu1 %v5576_v37  ;;  %5044 = vmatprep.mubr.msk.bf16.mxu1 %vm680_vm1, %v2218_v48 }
 0x297   : > { %5050 = vmatprep.subr.bf16.mxu1 %v5577_v60 }
 0x29a   : > { %5051 = vmatpush3.bf16.msra.mxu1 %v5577_v60 }
 0x29b   : > { %5060 = vmatprep.subr.bf16.mxu1 %v5578_v5 }
 0x29d   : > { %5045 = vmatmul.mubr.msk.bf16.gmra.mrb[12].mxu1 %vm680_vm1, %v2219_v7 }
 0x29e   : > { %5052 = vmatprep.mubr.msk.bf16.mxu1 %vm680_vm1, %v6298_v58  ;;  %v2418_v58 = vmul.bf16 %v6325_v17, %v6341_v38  ;;  %v2526_v38 = vld [vmem:[%s7083_s12] sm:$0xff] }
 0x2a5   : > { %5053 = vmatmul.mubr.msk.bf16.vlgmr.msra.gmra.mrb[8].mxu1 %vm680_vm1, %v6303_v59  ;;  %v2419_v59 = vmul.bf16 %v6345_v40, %v6348_v49  ;;  %v2527_v49 = vld [vmem:[%s7083_s12 + $0x8] sm:$0xff] }
 0x2a6   : > { %5061 = vmatpush3.bf16.msra.mxu1 %v5578_v5  ;;  %5056 = vmatprep.mubr.msk.bf16.mxu1 %vm680_vm1, %v6330_v29  ;;  %v2420_v29 = vmul.bf16 %v6351_v44, %v6377_v9  ;;  %v6507_v8 = vpack.c.bf16 %v2527_v49, %v2526_v38  ;;  %v2531_v9 = vld [vmem:[%s7083_s12 + $0x28] sm:$0xff] }
 0x2a7   : > { %5062 = vmatprep.subr.bf16.mxu1 %v5579_v24  ;;  %v6523_v13 = vpack.c.bf16 %v2531_v9, %v2530_v16 }
 0x2aa   : > { %5063 = vmatpush3.bf16.msra.mxu1 %v5579_v24 }
 0x2ab   : > { %5318 = vmatprep.subr.bf16.mxu1 %v5762_v3 }
 0x2ad   : > { %5057 = vmatmul.mubr.msk.bf16.gmra.mrb[12].mxu1 %vm680_vm1, %v2323_v14 }
 0x2ae   : > { %5064 = vmatprep.mubr.msk.bf16.mxu1 %vm680_vm1, %v2418_v58 }
 0x2b5   : > { %5065 = vmatmul.mubr.msk.bf16.vlgmr.msra.gmra.mrb[8].mxu1 %vm680_vm1, %v2419_v59 }
 0x2b6   : > { %5068 = vmatprep.mubr.msk.bf16.mxu1 %vm680_vm1, %v2420_v29  ;;  %5320 = vmatpush3.bf16.msra.mxu1 %v6507_v8 }
 0x2b7   : > { %5321 = vmatprep.subr.bf16.mxu1 %v5762_v3 }
 0x2ba   : > { %5323 = vmatpush3.bf16.msra.mxu1 %v6513_v22 }
 0x2bb   : > { %5324 = vmatprep.subr.bf16.mxu1 %v5762_v3 }
 0x2bd   : > { %5069 = vmatmul.mubr.msk.bf16.gmra.mrb[12].mxu1 %vm680_vm1, %v2421_v18 }
 0x2be   : > { %5088 = vmatprep.mubr.msk.f32.mxu1 %vm5763_vm0, %v5764_v6  ;;  %5326 = vmatpush3.bf16.msra.mxu1 %v6523_v13 }
 0x2bf   : > { %5327 = vmatprep.subr.bf16.mxu1 %v5762_v3 }
 0x2c2   : > { %5329 = vmatpush3.bf16.msra.mxu1 %v6533_v20 }
 0x2c3   : > { %5330 = vmatprep.subr.bf16.mxu1 %v5762_v3 }
 0x388   : > { %v5066_v31 = vpop.f32.mrb[8].mxu1 }
 0x389   : > { %v6556_v35 = vadd.f32 %v5066_v31, %v1491_v34  ;;  %v2485_v55 = vpop.f32.mrb[9].mxu1 }
 0x38a   : > { %v6558_v63 = vadd.f32 %v2485_v55, %v1491_v34  ;;  %v5067_v42 = vpop.f32.mrb[10].mxu1 }
 0x38b   : > { %v6560_v0 = vadd.f32 %v5067_v42, %v1491_v34  ;;  %v2488_v43 = vpop.f32.mrb[11].mxu1  ;;  %v2562_v26 = vmul.f32 %v6556_v35, %v6556_v35  ;;  %v2542_v62 = vsel %vm2538_vm14, %v6556_v35, 0.0 }
 0x38c   : > { %v2560_v47 = vmul.f32 %v6558_v63, %v6558_v63  ;;  %v6564_v32 = vadd.f32 %v2488_v43, %v1491_v34  ;;  %v2539_v45 = vsel %vm2538_vm14, %v6558_v63, 0.0 }
 0x38d   : > { %v2563_v52 = vmul.f32 %v6560_v0, %v6560_v0  ;;  %v2571_v14 = vsel %vm2538_vm14, %v2562_v26, 0.0  ;;  %v2544_v58 = vsel %vm2538_vm14, %v6560_v0, 0.0 }
 0x38e   : > { %v2540_v50 = vsel %vm2538_vm14, %v6564_v32, 0.0  ;;  %v2561_v37 = vmul.f32 %v6564_v32, %v6564_v32  ;;  %v2568_v4 = vsel %vm2538_vm14, %v2560_v47, 0.0 }
 0x38f   : > { %v2541_v51 = vadd.f32 %v2540_v50, %v2539_v45  ;;  %v2573_v46 = vsel %vm2538_vm14, %v2563_v52, 0.0 }
 0x390   : > { %v2569_v60 = vsel %vm2538_vm14, %v2561_v37, 0.0  ;;  %v5070_v48 = vpop.f32.mrb[12].mxu1 }
 0x391   : > { %v2543_v5 = vadd.f32 %v2542_v62, %v2541_v51  ;;  %v2570_v15 = vadd.f32 %v2569_v60, %v2568_v4  ;;  %v6580_v7 = vadd.f32 %v5070_v48, %v1491_v34  ;;  %v2501_v24 = vpop.f32.mrb[13].mxu1 }
 0x392   : > { %v6585_v59 = vadd.f32 %v2501_v24, %v1491_v34  ;;  %v5071_v29 = vpop.f32.mrb[14].mxu1 }
 0x393   : > { %v2572_v18 = vadd.f32 %v2571_v14, %v2570_v15  ;;  %v2545_v38 = vadd.f32 %v2544_v58, %v2543_v5  ;;  %v2504_v49 = vpop.f32.mrb[15].mxu1  ;;  %v6592_v16 = vadd.f32 %v5071_v29, %v1491_v34  ;;  %v2566_v30 = vmul.f32 %v6580_v7, %v6580_v7 }
 0x394   : > { %v2546_v39 = vsel %vm2538_vm14, %v6585_v59, 0.0  ;;  %v2564_v21 = vmul.f32 %v6585_v59, %v6585_v59  ;;  %v6594_v9 = vadd.f32 %v2504_v49, %v1491_v34  ;;  %v2550_v31 = vsel %vm2538_vm14, %v6580_v7, 0.0 }
 0x395   : > { %v2547_v11 = vadd.f32 %v2546_v39, %v2545_v38  ;;  %v2574_v19 = vadd.f32 %v2573_v46, %v2572_v18  ;;  %v2552_v42 = vsel %vm2538_vm14, %v6592_v16, 0.0  ;;  %v2567_v43 = vmul.f32 %v6592_v16, %v6592_v16 }
 0x396   : > { %v2575_v61 = vsel %vm2538_vm14, %v2564_v21, 0.0  ;;  %v2548_v27 = vsel %vm2538_vm14, %v6594_v9, 0.0  ;;  %v2565_v1 = vmul.f32 %v6594_v9, %v6594_v9  ;;  %v2579_v26 = vsel %vm2538_vm14, %v2566_v30, 0.0  ;;  %v5691_v30 = vld [vmem:[%s5968_s3 + $0x8] sm:$0xff] }
 0x397   : > { %v2576_v28 = vadd.f32 %v2575_v61, %v2574_v19  ;;  %v2549_v54 = vadd.f32 %v2548_v27, %v2547_v11  ;;  %v2581_v52 = vsel %vm2538_vm14, %v2567_v43, 0.0 }
 0x398   : > { %v2577_v55 = vsel %vm2538_vm14, %v2565_v1, 0.0  ;;  %v5692_v1 = vld [vmem:[%s5968_s3 + $0x10] sm:$0xff] }
 0x399   : > { %v2551_v34 = vadd.f32 %v2550_v31, %v2549_v54  ;;  %v2578_v47 = vadd.f32 %v2577_v55, %v2576_v28  ;;  %v5582_v54 = vld [vmem:[%s7085_s14] sm:$0xff]   ;;  %v5693_v31 = vld [vmem:[%s5968_s3 + $0x18] sm:$0xff] }
 0x39a   : > { %v5694_v55 = vld [vmem:[%s5968_s3 + $0x20] sm:$0xff] }
 0x39b   : > { %v2553_v45 = vadd.f32 %v2552_v42, %v2551_v34  ;;  %v2580_v50 = vadd.f32 %v2579_v26, %v2578_v47  ;;  %v2997_v34 = vpack.c.bf16 %v5693_v31, %v5692_v1  ;;  %v5695_v42 = vld [vmem:[%s5968_s3 + $0x28] sm:$0xff]  ;;  %v5584_v26 = vld [vmem:[%s7085_s14 + $0x10] sm:$0xff]  }
 0x39c   : > { %v2998_v43 = vpack.c.bf16 %v5695_v42, %v5694_v55  ;;  %v5583_v47 = vld [vmem:[%s7085_s14 + $0x8] sm:$0xff]  }
 0x39d   : > { %v2554_v37 = vrot.slane %v2553_v45, 4  ;;  %v2582_v62 = vadd.f32 %v2581_v52, %v2580_v50  ;;  %v5697_v50 = vld [vmem:[%s5968_s3 + $0x38] sm:$0xff] }
 0x39e   : > { %v5585_v52 = vld [vmem:[%s7085_s14 + $0x18] sm:$0xff]  }
 0x39f   : > { %v2555_v51 = vadd.f32 %v2554_v37, %v2553_v45  ;;  %v2583_v48 = vrot.slane %v2582_v62, 4  ;;  %v5696_v45 = vld [vmem:[%s5968_s3 + $0x30] sm:$0xff] }
 0x3a0   : > { %v2999_v37 = vpack.c.bf16 %v5697_v50, %v5696_v45 }
 0x3a1   : > { %v2556_v4 = vrot.slane %v2555_v51, 2  ;;  %v2584_v24 = vadd.f32 %v2583_v48, %v2582_v62 }
 0x3a3   : > { %v2557_v60 = vadd.f32 %v2556_v4, %v2555_v51  ;;  %v2585_v14 = vrot.slane %v2584_v24, 2  ;;  %v6669_v51 = vld [vmem:[%s7085_s14 + $0x20] sm:$0xff]  }
 0x3a5   : > { %v2558_v5 = vrot.slane %v2557_v60, 1  ;;  %v2586_v58 = vadd.f32 %v2585_v14, %v2584_v24 }
 0x3a7   : > { %v2559_v15 = vadd.f32 %v2558_v5, %v2557_v60  ;;  %v2587_v29 = vrot.slane %v2586_v58, 1 }
 0x3a9   : > { %5089 = vmatmul.mubr.msk.f32.vlgmr.msra.gmra.mrb[6].mxu1 %vm2538_vm14, %v2559_v15  ;;  %v2588_v46 = vadd.f32 %v2587_v29, %v2586_v58 }
 0x3aa   : > { %5332 = vmatpush3.bf16.msra.mxu1 %v6507_v8  ;;  %5107 = vmatprep.mubr.msk.f32.mxu1 %vm5763_vm0, %v5764_v6  ;;  %v2536_v8 = vld [vmem:[%s7084_s13 + $0x10] sm:$0xff] }
 0x3ab   : > { %5333 = vmatprep.subr.bf16.mxu1 %v5762_v3 }
 0x3ae   : > { %5335 = vmatpush3.bf16.msra.mxu1 %v6513_v22  ;;  %v2537_v22 = vld [vmem:[%s7084_s13 + $0x18] sm:$0xff] }
 0x3af   : > { %5336 = vmatprep.subr.bf16.mxu1 %v5762_v3  ;;  %v5346_v18 = vpack.c.bf16 %v2537_v22, %v2536_v8 }
 0x3b1   : > { %5347 = vmatpush3.bf16.msra.mxu0 %v5346_v18 }
 0x3b2   : > { %5338 = vmatpush3.bf16.msra.mxu1 %v6523_v13  ;;  %5348 = vmatprep.subr.bf16.mxu0 %v5762_v3 }
 0x3b3   : > { %5339 = vmatprep.subr.bf16.mxu1 %v5762_v3 }
 0x3b6   : > { %5341 = vmatpush3.bf16.msra.mxu1 %v6533_v20 }
 0x3b9   : > { %5108 = vmatmul.mubr.msk.f32.vlgmr.msra.gmra.mrb[16].mxu1 %vm2538_vm14, %v2588_v46 }
 0x47c   : > { %v2658_v13 = vpop.f32.mrb[6].mxu1 }
 0x47d   : > { %v2736_v38 = vmul.f32 0.0078125, %v2658_v13  ;;  %v5090_v49 = vpop.f32.mrb[7].mxu1 }
 0x47f   : > { %5119 = vmatmul.mubr.msk.f32.vlgmr.msra.gmra.mrb[4].mxu0 %vm680_vm1, %v2736_v38  ;;  %v2738_v39 = vmul.f32 %v2736_v38, %v2736_v38 }
 0x480   : > { %5350 = vmatpush3.bf16.msra.mxu0 %v6544_v33  ;;  %5129 = vmatprep.mubr.msk.f32.mxu0 %vm5763_vm0, %v5764_v6  ;;  %v5580_v6 = vld [vmem:[%s7087_s16] sm:$0xff]  }
 0x481   : > { %5351 = vmatprep.subr.bf16.mxu0 %v5762_v3  ;;  %v5581_v3 = vld [vmem:[%s7087_s16 + $0x8] sm:$0xff]   ;;  %v5690_v33 = vld [vmem:[%s5968_s3] sm:$0xff]  ;;  %s7021_s3 = scalar_lea.hbm %s7091_s20, %s4723_s5 }
 0x482   : > { %v2996_v28 = vpack.c.bf16 %v5691_v30, %v5690_v33 }
 0x484   : > { %5353 = vmatpush3.bf16.msra.mxu0 %v5346_v18 }
 0x485   : > { %5132 = vmatprep.subr.bf16.mxu0 %v5580_v6 }
 0x48c   : > { %v2731_v20 = vpop.f32.mrb[16].mxu1 }
 0x48d   : > { %v2737_v21 = vmul.f32 0.0078125, %v2731_v20  ;;  %v5109_v11 = vpop.f32.mrb[17].mxu1 }
 0x48f   : > { %v2739_v19 = vsub.f32 %v2737_v21, %v2738_v39 }
 0x491   : > { %v2740_v61 = vadd.f32 1e-05, %v2739_v19 }
 0x493   : > { %5656 = vrsqrt.f32 %v2740_v61 }
 0x49d   : > { %v5657_v27 = vpop.eup %5656 }
 0x49e   : > { %5130 = vmatmul.mubr.msk.f32.vlgmr.msra.gmra.mrb[6].mxu0 %vm680_vm1, %v5657_v27 }
 0x49f   : > { %5136 = vmatprep.mubr.msk.bf16.mxu0 %vm680_vm1, %v2996_v28  ;;  %5133 = vmatpush3.bf16.msra.mxu0 %v5580_v6 }
 0x4a0   : > { %5134 = vmatprep.subr.bf16.mxu0 %v5581_v3 }
 0x4a3   : > { %5135 = vmatpush3.bf16.msra.mxu0 %v5581_v3 }
 0x4a4   : > { %5144 = vmatprep.subr.bf16.mxu0 %v5582_v54 }
 0x4a6   : > { %5137 = vmatmul.mubr.msk.bf16.vlgmr.msra.gmra.mrb[8].mxu0 %vm680_vm1, %v2997_v34 }
 0x4a7   : > { %5145 = vmatpush3.bf16.msra.mxu0 %v5582_v54  ;;  %5140 = vmatprep.mubr.msk.bf16.mxu0 %vm680_vm1, %v2998_v43 }
 0x4a8   : > { %5146 = vmatprep.subr.bf16.mxu0 %v5583_v47 }
 0x4ab   : > { %5147 = vmatpush3.bf16.msra.mxu0 %v5583_v47 }
 0x4ac   : > { %5148 = vmatprep.subr.bf16.mxu0 %v5584_v26 }
 0x4ae   : > { %5141 = vmatmul.mubr.msk.bf16.gmra.mrb[12].mxu0 %vm680_vm1, %v2999_v37 }
 0x4af   : > { %5149 = vmatpush3.bf16.msra.mxu0 %v5584_v26 }
 0x4b0   : > { %5150 = vmatprep.subr.bf16.mxu0 %v5585_v52 }
 0x4b3   : > { %5151 = vmatpush3.bf16.msra.mxu0 %v5585_v52 }
 0x4b4   : > { %5160 = vmatprep.subr.bf16.mxu0 %v6669_v51 }
 0x552   : > { %v2811_v62 = vpop.f32.mrb[4].mxu0 }
 0x553   : > { %v5120_v4 = vpop.f32.mrb[5].mxu0  ;;  %v2891_v60 = vrot.slane %v2811_v62, %v6138_v2 }
 0x555   : > { %v2892_v48 = vsub.f32 %v6558_v63, %v2891_v60  ;;  %v2893_v15 = vsub.f32 %v6564_v32, %v2891_v60  ;;  %v2894_v24 = vsub.f32 %v6556_v35, %v2891_v60  ;;  %v2895_v14 = vsub.f32 %v6560_v0, %v2891_v60  ;;  %v4547_v63 = vld [vmem:[%s7081_s10] ss:$0 sm:$0xff] }
 0x556   : > { %v2896_v46 = vsub.f32 %v6585_v59, %v2891_v60  ;;  %v2897_v8 = vsub.f32 %v6594_v9, %v2891_v60  ;;  %v2898_v22 = vsub.f32 %v6580_v7, %v2891_v60  ;;  %v2899_v18 = vsub.f32 %v6592_v16, %v2891_v60 }
 0x571   : > { %v2884_v5 = vpop.f32.mrb[6].mxu0 }
 0x572   : > { %v2903_v58 = vrot.slane %v2884_v5, %v6138_v2  ;;  %v5131_v29 = vpop.f32.mrb[7].mxu0  ;;  %v4548_v2 = vld [vmem:[%s7082_s11] ss:$0 sm:$0xff] }
 0x574   : > { %v2904_v32 = vmul.f32 %v2903_v58, %v2892_v48  ;;  %v2905_v13 = vmul.f32 %v2903_v58, %v2893_v15  ;;  %v2906_v35 = vmul.f32 %v2903_v58, %v2894_v24  ;;  %v2907_v38 = vmul.f32 %v2903_v58, %v2895_v14 }
 0x575   : > { %v2908_v0 = vmul.f32 %v2903_v58, %v2896_v46  ;;  %v2909_v59 = vmul.f32 %v2903_v58, %v2897_v8  ;;  %v2910_v49 = vmul.f32 %v2903_v58, %v2898_v22  ;;  %v2911_v9 = vmul.f32 %v2903_v58, %v2899_v18 }
 0x576   : > { %v2920_v20 = vmul.f32 %v4547_v63, %v2906_v35  ;;  %v2921_v7 = vmul.f32 %v4547_v63, %v2907_v38  ;;  %v2918_v39 = vmul.f32 %v4547_v63, %v2904_v32  ;;  %v2919_v16 = vmul.f32 %v4547_v63, %v2905_v13 }
 0x577   : > { %v2922_v21 = vmul.f32 %v4547_v63, %v2908_v0  ;;  %v2923_v11 = vmul.f32 %v4547_v63, %v2909_v59  ;;  %v2924_v19 = vmul.f32 %v4547_v63, %v2910_v49  ;;  %v2925_v61 = vmul.f32 %v4547_v63, %v2911_v9 }
 0x578   : > { %v2934_v27 = vadd.f32 %v4548_v2, %v2920_v20  ;;  %v2935_v6 = vadd.f32 %v4548_v2, %v2921_v7  ;;  %v2932_v3 = vadd.f32 %v4548_v2, %v2918_v39  ;;  %v2933_v33 = vadd.f32 %v4548_v2, %v2919_v16 }
 0x579   : > { %v2936_v30 = vadd.f32 %v4548_v2, %v2922_v21  ;;  %v2937_v28 = vadd.f32 %v4548_v2, %v2923_v11  ;;  %v2938_v34 = vadd.f32 %v4548_v2, %v2924_v19  ;;  %v2939_v42 = vadd.f32 %v4548_v2, %v2925_v61 }
 0x57a   : > { %v4551_v54 = vmul.f32 -1.442695, %v2934_v27  ;;  %v4552_v1 = vmul.f32 -1.442695, %v2935_v6  ;;  %v4549_v31 = vmul.f32 -1.442695, %v2932_v3 }
 0x57b   : > { %v4550_v55 = vmul.f32 -1.442695, %v2933_v33  ;;  %v4553_v43 = vmul.f32 -1.442695, %v2936_v30  ;;  %v4554_v47 = vmul.f32 -1.442695, %v2937_v28 }
 0x57c   : > { %5658 = vpow2.f32 %v4551_v54  ;;  %v4555_v26 = vmul.f32 -1.442695, %v2938_v34  ;;  %v4556_v45 = vmul.f32 -1.442695, %v2939_v42 }
 0x57d   : > { %5660 = vpow2.f32 %v4552_v1 }
 0x57e   : > { %5662 = vpow2.f32 %v4549_v31 }
 0x57f   : > { %5664 = vpow2.f32 %v4550_v55 }
 0x580   : > { %5666 = vpow2.f32 %v4553_v43 }
 0x581   : > { %5668 = vpow2.f32 %v4554_v47 }
 0x582   : > { %5670 = vpow2.f32 %v4555_v26 }
 0x583   : > { %5672 = vpow2.f32 %v4556_v45 }
 0x586   : > { %v5659_v50 = vpop.eup %5658 }
 0x587   : > { %v5661_v37 = vpop.eup %5660  ;;  %v2966_v52 = vadd.f32 1.0, %v5659_v50 }
 0x588   : > { %v5663_v62 = vpop.eup %5662  ;;  %v2967_v4 = vadd.f32 1.0, %v5661_v37 }
 0x589   : > { %v5665_v60 = vpop.eup %5664  ;;  %5674 = vrcp.f32 %v2966_v52  ;;  %v2964_v48 = vadd.f32 1.0, %v5663_v62 }
 0x58a   : > { %v5667_v5 = vpop.eup %5666  ;;  %5676 = vrcp.f32 %v2967_v4  ;;  %v2965_v15 = vadd.f32 1.0, %v5665_v60 }
 0x58b   : > { %v5669_v24 = vpop.eup %5668  ;;  %5678 = vrcp.f32 %v2964_v48  ;;  %v2968_v14 = vadd.f32 1.0, %v5667_v5  ;;  %v5587_v5 = vld [vmem:[%s7085_s14 + $0x28] sm:$0xff]  }
 0x58c   : > { %v5671_v58 = vpop.eup %5670  ;;  %5680 = vrcp.f32 %v2965_v15  ;;  %v2969_v29 = vadd.f32 1.0, %v5669_v24 }
 0x58d   : > { %v5673_v46 = vpop.eup %5672  ;;  %5682 = vrcp.f32 %v2968_v14  ;;  %v2970_v8 = vadd.f32 1.0, %v5671_v58 }
 0x58e   : > { %5684 = vrcp.f32 %v2969_v29  ;;  %v2971_v22 = vadd.f32 1.0, %v5673_v46  ;;  %v5588_v29 = vld [vmem:[%s7085_s14 + $0x30] sm:$0xff]  }
 0x58f   : > { %5686 = vrcp.f32 %v2970_v8 }
 0x590   : > { %5688 = vrcp.f32 %v2971_v22 }
 0x593   : > { %v5675_v18 = vpop.eup %5674 }
 0x594   : > { %v5677_v63 = vpop.eup %5676  ;;  %v2990_v32 = vmul.f32 %v5675_v18, %v2934_v27  ;;  %v5589_v18 = vld [vmem:[%s7085_s14 + $0x38] sm:$0xff]  }
 0x595   : > { %v5679_v13 = vpop.eup %5678  ;;  %v2991_v35 = vmul.f32 %v5677_v63, %v2935_v6 }
 0x596   : > { %v5681_v38 = vpop.eup %5680  ;;  %v2988_v2 = vmul.f32 %v5679_v13, %v2932_v3 }
 0x597   : > { %v5683_v0 = vpop.eup %5682  ;;  %v2989_v59 = vmul.f32 %v5681_v38, %v2933_v33  ;;  %v6688_v49 = vpack.c.bf16 %v2991_v35, %v2990_v32 }
 0x598   : > { %v5685_v9 = vpop.eup %5684  ;;  %v2992_v20 = vmul.f32 %v5683_v0, %v2936_v30  ;;  %v5590_v0 = vld [vmem:[%s7085_s14 + $0x40] sm:$0xff]  }
 0x599   : > { %v5687_v7 = vpop.eup %5686  ;;  %v6690_v39 = vpack.c.bf16 %v2989_v59, %v2988_v2  ;;  %v6693_v16 = vshrl.u32 %v6688_v49, 16  ;;  %v6696_v21 = vshll.u32 %v6688_v49, 16  ;;  %v2993_v11 = vmul.f32 %v5685_v9, %v2937_v28 }
 0x59a   : > { %v5689_v19 = vpop.eup %5688  ;;  %v2994_v61 = vmul.f32 %v5687_v7, %v2938_v34 }
 0x59b   : > { %v6699_v27 = vshrl.u32 %v6690_v39, 16  ;;  %v6702_v6 = vshll.u32 %v6690_v39, 16  ;;  %v3130_v3 = vrot.slane %v6693_v16, 3  ;;  %v3133_v33 = vrot.slane %v6696_v21, 4 }
 0x59c   : > { %v6706_v30 = vpack.c.bf16 %v2993_v11, %v2992_v20  ;;  %v2995_v54 = vmul.f32 %v5689_v19, %v2939_v42  ;;  %v3284_v8 = vrot.slane %v6690_v39, 4  ;;  %v3806_v63 = vrot.slane %v6696_v21, 1 }
 0x59d   : > { %v3122_v1 = vrot.slane %v6699_v27, 3  ;;  %v3125_v31 = vrot.slane %v6702_v6, 4  ;;  %v3134_v28 = vor.u32 %v3133_v33, %v3130_v3  ;;  %v3804_v22 = vrot.slane %v6702_v6, 1 }
 0x59e   : > { %v6711_v34 = vshrl.u32 %v6706_v30, 16  ;;  %v6714_v55 = vshll.u32 %v6706_v30, 16  ;;  %v6716_v43 = vpack.c.bf16 %v2995_v54, %v2994_v61  ;;  %v3292_v32 = vsel %vm1505_vm5, 0, %v3284_v8  ;;  %v5591_v54 = vld [vmem:[%s7085_s14 + $0x48] sm:$0xff]  }
 0x59f   : > { %v3126_v47 = vor.u32 %v3125_v31, %v3122_v1  ;;  %v3805_v13 = vor.u32 %v3804_v22, %v6699_v27  ;;  %v3808_v35 = vor.u32 %v3806_v63, %v6693_v16  ;;  %v3285_v20 = vrot.slane %v6688_v49, 4 }
 0x5a0   : > { %v3139_v26 = vrot.slane %v6711_v34, 3  ;;  %v3142_v45 = vrot.slane %v6714_v55, 4  ;;  %v6721_v42 = vshrl.u32 %v6716_v43, 16  ;;  %v6724_v50 = vshll.u32 %v6716_v43, 16 }
 0x5a1   : > { %v6727_v37 = vsel %vm1227_vm2, %v3126_v47, %v3134_v28  ;;  %v3158_v52 = vsel %vm6203_vm4, 0, %v3126_v47  ;;  %v3809_v38 = vrot.slane %v6714_v55, 1  ;;  %v6776_v59 = vsel %vm2089_vm6, %v3805_v13, %v3806_v63  ;;  %v5592_v47 = vld [vmem:[%s7085_s14 + $0x50] sm:$0xff]  }
 0x5a2   : > { %v3159_v62 = vmul.bf16 %v6217_v57, %v3158_v52  ;;  %v3160_v4 = vmul.bf16 %v6215_v56, %v6727_v37  ;;  %v3143_v60 = vor.u32 %v3142_v45, %v3139_v26  ;;  %v3148_v48 = vrot.slane %v6721_v42, 3 }
 0x5a3   : > { %v3151_v15 = vrot.slane %v6724_v50, 4  ;;  %v3812_v2 = vrot.slane %v6724_v50, 1  ;;  %v6779_v9 = vsel %vm2089_vm6, %v3808_v35, %v3809_v38  ;;  %v3811_v7 = vor.u32 %v3809_v38, %v6711_v34  ;;  %v5595_v35 = vld [vmem:[%s7085_s14 + $0x68] sm:$0xff]  }
 0x5a4   : > { %5152 = vmatprep.mubr.msk.bf16.mxu0 %vm2538_vm14, %v3159_v62  ;;  %v6741_v24 = vsel %vm1227_vm2, %v3134_v28, %v3143_v60  ;;  %v3287_v19 = vrot.slane %v6706_v30, 4  ;;  %v3410_v61 = vrot.slane %v6699_v27, 4  ;;  %v3411_v3 = vrot.slane %v6702_v6, 5 }
 0x5a5   : > { %5153 = vmatmul.mubr.msk.bf16.vlgmr.msra.gmra.mrb[8].mxu0 %vm2538_vm14, %v3160_v4  ;;  %v3161_v14 = vmul.bf16 %v6237_v12, %v6741_v24  ;;  %v6746_v58 = vor.u32 %v3151_v15, %v3148_v48  ;;  %v6784_v11 = vor.u32 %v3812_v2, %v6721_v42  ;;  %v6790_v33 = vsel %vm2089_vm6, %v3811_v7, %v3812_v2  ;;  %v5593_v48 = vld [vmem:[%s7085_s14 + $0x58] sm:$0xff]  }
 0x5a6   : > { %5161 = vmatpush3.bf16.msra.mxu0 %v6669_v51  ;;  %v6796_v1 = vsel %vm1505_vm5, %v3284_v8, %v3285_v20  ;;  %v6801_v31 = vsel %vm1505_vm5, %v3285_v20, %v3287_v19  ;;  %v3412_v28 = vor.u32 %v3411_v3, %v3410_v61  ;;  %v3289_v26 = vrot.slane %v6716_v43, 4  ;;  %v5594_v8 = vld [vmem:[%s7085_s14 + $0x60] sm:$0xff]   ;;  %v5597_v3 = vld [vmem:[%s7085_s14 + $0x78] sm:$0xff]  }
 0x5a7   : > { %5156 = vmatprep.mubr.msk.bf16.mxu0 %vm2538_vm14, %v3161_v14  ;;  %5162 = vmatprep.subr.bf16.mxu0 %v5587_v5  ;;  %v6755_v46 = vsel %vm1227_vm2, %v3143_v60, %v6746_v58  ;;  %v3413_v45 = vrot.slane %v6693_v16, 4  ;;  %v3414_v52 = vrot.slane %v6696_v21, 5  ;;  %v3417_v4 = vrot.slane %v6711_v34, 4 }
 0x5a8   : > { %v3162_v51 = vmul.bf16 %v6264_v25, %v6755_v46  ;;  %v3429_v62 = vsel %vm6311_vm8, 0, %v3412_v28  ;;  %v3418_v60 = vrot.slane %v6714_v55, 5  ;;  %v3554_v7 = vrot.slane %v6693_v16, 7  ;;  %v5598_v16 = vld [vmem:[%s7085_s14 + $0x80] sm:$0xff]  }
 0x5a9   : > { %v3415_v15 = vor.u32 %v3414_v52, %v3413_v45  ;;  %v3430_v14 = vmul.bf16 %v6325_v17, %v3429_v62  ;;  %v3557_v61 = vrot.slane %v6711_v34, 7 }
 0x5aa   : > { %5163 = vmatpush3.bf16.msra.mxu0 %v5587_v5  ;;  %v6821_v5 = vsel %vm1505_vm5, %v3287_v19, %v3289_v26 }
 0x5ab   : > { %5164 = vmatprep.subr.bf16.mxu0 %v5588_v29  ;;  %v6831_v22 = vsel %vm1618_vm7, %v3412_v28, %v3415_v15  ;;  %v3558_v23 = vor.u32 %v3557_v61, %v6714_v55  ;;  %v5599_v55 = vld [vmem:[%s7085_s14 + $0x88] sm:$0xff]  }
 0x5ac   : > { %v3431_v13 = vmul.bf16 %v6345_v40, %v6831_v22 }
 0x5ad   : > { %5157 = vmatmul.mubr.msk.bf16.gmra.mrb[12].mxu0 %vm2538_vm14, %v3162_v51  ;;  %v3421_v51 = vrot.slane %v6721_v42, 4 }
 0x5ae   : > { %5165 = vmatpush3.bf16.msra.mxu0 %v5588_v29  ;;  %5168 = vmatprep.mubr.msk.bf16.mxu0 %vm2538_vm14, %v3292_v32  ;;  %v3419_v29 = vor.u32 %v3418_v60, %v3417_v4  ;;  %v3552_v32 = vrot.slane %v6699_v27, 7  ;;  %v5596_v27 = vld [vmem:[%s7085_s14 + $0x70] sm:$0xff]  }
 0x5af   : > { %5166 = vmatprep.subr.bf16.mxu0 %v5589_v18 }
 0x5b0   : > { %v6836_v63 = vsel %vm1618_vm7, %v3415_v15, %v3419_v29  ;;  %v5603_v15 = vld [vmem:[%s7085_s14 + $0xa8] sm:$0xff]  }
 0x5b1   : > { %v3432_v38 = vmul.bf16 %v6351_v44, %v6836_v63 }
 0x5b2   : > { %5167 = vmatpush3.bf16.msra.mxu0 %v5589_v18  ;;  %v3422_v18 = vrot.slane %v6724_v50, 5 }
 0x5b3   : > { %5176 = vmatprep.subr.bf16.mxu0 %v5590_v0 }
 0x5b4   : > { %v6846_v2 = vor.u32 %v3422_v18, %v3421_v51  ;;  %v5608_v51 = vld [vmem:[%s7085_s14 + $0xd0] sm:$0xff]  }
 0x5b5   : > { %5169 = vmatmul.mubr.msk.bf16.vlgmr.msra.gmra.mrb[8].mxu0 %vm2538_vm14, %v6796_v1 }
 0x5b6   : > { %5177 = vmatpush3.bf16.msra.mxu0 %v5590_v0  ;;  %5172 = vmatprep.mubr.msk.bf16.mxu0 %vm2538_vm14, %v6801_v31  ;;  %v3553_v0 = vor.u32 %v3552_v32, %v6702_v6  ;;  %v6856_v20 = vsel %vm1618_vm7, %v3419_v29, %v6846_v2  ;;  %v3820_v29 = vmul.bf16 %v6325_v17, %v6776_v59  ;;  %v5607_v59 = vld [vmem:[%s7085_s14 + $0xc8] sm:$0xff]  }
 0x5b7   : > { %5178 = vmatprep.subr.bf16.mxu0 %v5591_v54  ;;  %v3433_v6 = vmul.bf16 %v6380_v41, %v6856_v20 }
 0x5b8   : > { %v3567_v19 = vsel %vm6368_vm11, 0, %v3553_v0 }
 0x5b9   : > { %v3568_v28 = vmul.bf16 %v6217_v57, %v3567_v19 }
 0x5ba   : > { %5179 = vmatpush3.bf16.msra.mxu0 %v5591_v54  ;;  %v3555_v54 = vor.u32 %v3554_v7, %v6696_v21  ;;  %v3559_v21 = vsel %vm1866_vm9, %v3554_v7, %v3558_v23 }
 0x5bb   : > { %5180 = vmatprep.subr.bf16.mxu0 %v5592_v47  ;;  %v3570_v52 = vmul.bf16 %v6237_v12, %v3559_v21 }
 0x5bc   : > { %v3556_v34 = vsel %vm1866_vm9, %v3552_v32, %v3555_v54  ;;  %v3944_v32 = vmul.bf16 %v6217_v57, %v6727_v37  ;;  %v3946_v57 = vmul.bf16 %v6237_v12, %v6755_v46  ;;  %v5612_v37 = vld [vmem:[%s7085_s14 + $0xf0] sm:$0xff]   ;;  %v5613_v12 = vld [vmem:[%s7085_s14 + $0xf8] sm:$0xff]  }
 0x5bd   : > { %5173 = vmatmul.mubr.msk.bf16.gmra.mrb[12].mxu0 %vm2538_vm14, %v6821_v5  ;;  %v3569_v45 = vmul.bf16 %v6215_v56, %v3556_v34  ;;  %v5617_v46 = vld [vmem:[%s7085_s14 + $0x118] sm:$0xff]  }
 0x5be   : > { %5181 = vmatpush3.bf16.msra.mxu0 %v5592_v47  ;;  %5184 = vmatprep.mubr.msk.bf16.mxu0 %vm2538_vm14, %v3430_v14  ;;  %v3560_v47 = vrot.slane %v6721_v42, 7  ;;  %v5600_v42 = vld [vmem:[%s7085_s14 + $0x90] sm:$0xff]   ;;  %v5605_v14 = vld [vmem:[%s7085_s14 + $0xb8] sm:$0xff]  }
 0x5bf   : > { %5182 = vmatprep.subr.bf16.mxu0 %v5593_v48 }
 0x5c0   : > { %v3561_v62 = vor.u32 %v3560_v47, %v6724_v50  ;;  %v5601_v50 = vld [vmem:[%s7085_s14 + $0x98] sm:$0xff]  }
 0x5c2   : > { %5183 = vmatpush3.bf16.msra.mxu0 %v5593_v48  ;;  %v3562_v4 = vsel %vm1866_vm9, %v3557_v61, %v3561_v62  ;;  %v5602_v48 = vld [vmem:[%s7085_s14 + $0xa0] sm:$0xff]  }
 0x5c3   : > { %5192 = vmatprep.subr.bf16.mxu0 %v5594_v8  ;;  %v3571_v60 = vmul.bf16 %v6264_v25, %v3562_v4 }
 0x5c5   : > { %5185 = vmatmul.mubr.msk.bf16.vlgmr.msra.gmra.mrb[8].mxu0 %vm2538_vm14, %v3431_v13  ;;  %v5611_v13 = vld [vmem:[%s7085_s14 + $0xe8] sm:$0xff]  }
 0x5c6   : > { %5193 = vmatpush3.bf16.msra.mxu0 %v5594_v8  ;;  %5188 = vmatprep.mubr.msk.bf16.mxu0 %vm2538_vm14, %v3432_v38  ;;  %v3822_v8 = vmul.bf16 %v6351_v44, %v6790_v33  ;;  %v5609_v33 = vld [vmem:[%s7085_s14 + $0xd8] sm:$0xff]  }
 0x5c7   : > { %5194 = vmatprep.subr.bf16.mxu0 %v5595_v35 }
 0x5ca   : > { %5195 = vmatpush3.bf16.msra.mxu0 %v5595_v35 }
 0x5cb   : > { %5196 = vmatprep.subr.bf16.mxu0 %v5596_v27 }
 0x5cd   : > { %5189 = vmatmul.mubr.msk.bf16.gmra.mrb[12].mxu0 %vm2538_vm14, %v3433_v6 }
 0x5ce   : > { %5197 = vmatpush3.bf16.msra.mxu0 %v5596_v27  ;;  %5200 = vmatprep.mubr.msk.bf16.mxu0 %vm2538_vm14, %v3568_v28 }
 0x5cf   : > { %5198 = vmatprep.subr.bf16.mxu0 %v5597_v3 }
 0x5d2   : > { %5199 = vmatpush3.bf16.msra.mxu0 %v5597_v3 }
 0x5d3   : > { %5208 = vmatprep.subr.bf16.mxu0 %v5598_v16 }
 0x5d5   : > { %5201 = vmatmul.mubr.msk.bf16.vlgmr.msra.gmra.mrb[8].mxu0 %vm2538_vm14, %v3569_v45 }
 0x5d6   : > { %5209 = vmatpush3.bf16.msra.mxu0 %v5598_v16  ;;  %5204 = vmatprep.mubr.msk.bf16.mxu0 %vm2538_vm14, %v3570_v52 }
 0x5d7   : > { %5210 = vmatprep.subr.bf16.mxu0 %v5599_v55 }
 0x5da   : > { %5211 = vmatpush3.bf16.msra.mxu0 %v5599_v55 }
 0x5db   : > { %5212 = vmatprep.subr.bf16.mxu0 %v5600_v42 }
 0x5dd   : > { %5205 = vmatmul.mubr.msk.bf16.gmra.mrb[12].mxu0 %vm2538_vm14, %v3571_v60 }
 0x5de   : > { %5213 = vmatpush3.bf16.msra.mxu0 %v5600_v42  ;;  %5216 = vmatprep.mubr.msk.bf16.mxu0 %vm2538_vm14, %v6690_v39  ;;  %v5604_v39 = vld [vmem:[%s7085_s14 + $0xb0] sm:$0xff]  }
 0x5df   : > { %5214 = vmatprep.subr.bf16.mxu0 %v5601_v50 }
 0x5e2   : > { %5215 = vmatpush3.bf16.msra.mxu0 %v5601_v50 }
 0x5e3   : > { %5224 = vmatprep.subr.bf16.mxu0 %v5602_v48 }
 0x5e5   : > { %5217 = vmatmul.mubr.msk.bf16.vlgmr.msra.gmra.mrb[8].mxu0 %vm2538_vm14, %v6688_v49  ;;  %v5606_v49 = vld [vmem:[%s7085_s14 + $0xc0] sm:$0xff]  }
 0x5e6   : > { %5225 = vmatpush3.bf16.msra.mxu0 %v5602_v48  ;;  %5220 = vmatprep.mubr.msk.bf16.mxu0 %vm2538_vm14, %v6706_v30  ;;  %v3821_v30 = vmul.bf16 %v6345_v40, %v6779_v9  ;;  %v3819_v9 = vsel %vm6435_vm13, %v6784_v11, 0  ;;  %v3945_v11 = vmul.bf16 %v6215_v56, %v6741_v24  ;;  %v3943_v56 = vsel %vm6203_vm4, %v6746_v58, 0  ;;  %v5616_v58 = vld [vmem:[%s7085_s14 + $0x110] sm:$0xff]  }
 0x5e7   : > { %5226 = vmatprep.subr.bf16.mxu0 %v5603_v15  ;;  %v3823_v18 = vmul.bf16 %v6380_v41, %v3819_v9  ;;  %v3947_v24 = vmul.bf16 %v6264_v25, %v3943_v56  ;;  %v5615_v25 = vld [vmem:[%s7085_s14 + $0x108] sm:$0xff]  }
 0x5ea   : > { %5227 = vmatpush3.bf16.msra.mxu0 %v5603_v15 }
 0x5eb   : > { %5228 = vmatprep.subr.bf16.mxu0 %v5604_v39 }
 0x5ed   : > { %5221 = vmatmul.mubr.msk.bf16.gmra.mrb[12].mxu0 %vm2538_vm14, %v6716_v43  ;;  %v4180_v43 = vmul.bf16 %v6351_v44, %v6856_v20 }
 0x5ee   : > { %5229 = vmatpush3.bf16.msra.mxu0 %v5604_v39  ;;  %5232 = vmatprep.mubr.msk.bf16.mxu0 %vm2538_vm14, %v3820_v29 }
 0x5ef   : > { %5230 = vmatprep.subr.bf16.mxu0 %v5605_v14 }
 0x5f2   : > { %5231 = vmatpush3.bf16.msra.mxu0 %v5605_v14 }
 0x5f3   : > { %5240 = vmatprep.subr.bf16.mxu0 %v5606_v49 }
 0x5f5   : > { %5233 = vmatmul.mubr.msk.bf16.vlgmr.msra.gmra.mrb[8].mxu0 %vm2538_vm14, %v3821_v30 }
 0x5f6   : > { %5241 = vmatpush3.bf16.msra.mxu0 %v5606_v49  ;;  %5236 = vmatprep.mubr.msk.bf16.mxu0 %vm2538_vm14, %v3822_v8 }
 0x5f7   : > { %5242 = vmatprep.subr.bf16.mxu0 %v5607_v59 }
 0x5fa   : > { %5243 = vmatpush3.bf16.msra.mxu0 %v5607_v59 }
 0x5fb   : > { %5244 = vmatprep.subr.bf16.mxu0 %v5608_v51 }
 0x5fd   : > { %5237 = vmatmul.mubr.msk.bf16.gmra.mrb[12].mxu0 %vm2538_vm14, %v3823_v18 }
 0x5fe   : > { %5245 = vmatpush3.bf16.msra.mxu0 %v5608_v51  ;;  %5248 = vmatprep.mubr.msk.bf16.mxu0 %vm2538_vm14, %v3944_v32 }
 0x5ff   : > { %5246 = vmatprep.subr.bf16.mxu0 %v5609_v33 }
 0x602   : > { %5247 = vmatpush3.bf16.msra.mxu0 %v5609_v33 }
 0x603   : > { %5256 = vmatprep.subr.bf16.mxu0 %v5610_v36 }
 0x605   : > { %5249 = vmatmul.mubr.msk.bf16.vlgmr.msra.gmra.mrb[8].mxu0 %vm2538_vm14, %v3945_v11 }
 0x606   : > { %5257 = vmatpush3.bf16.msra.mxu0 %v5610_v36  ;;  %5252 = vmatprep.mubr.msk.bf16.mxu0 %vm2538_vm14, %v3946_v57 }
 0x607   : > { %5258 = vmatprep.subr.bf16.mxu0 %v5611_v13 }
 0x60a   : > { %5259 = vmatpush3.bf16.msra.mxu0 %v5611_v13 }
 0x60b   : > { %5260 = vmatprep.subr.bf16.mxu0 %v5612_v37 }
 0x60d   : > { %5253 = vmatmul.mubr.msk.bf16.gmra.mrb[12].mxu0 %vm2538_vm14, %v3947_v24 }
 0x60e   : > { %5261 = vmatpush3.bf16.msra.mxu0 %v5612_v37  ;;  %5264 = vmatprep.mubr.msk.bf16.mxu0 %vm2538_vm14, %v6796_v1  ;;  %v4067_v1 = vsel %vm1505_vm5, %v3289_v26, 0 }
 0x60f   : > { %5262 = vmatprep.subr.bf16.mxu0 %v5613_v12 }
 0x612   : > { %5263 = vmatpush3.bf16.msra.mxu0 %v5613_v12 }
 0x613   : > { %5272 = vmatprep.subr.bf16.mxu0 %v5614_v53 }
 0x615   : > { %5265 = vmatmul.mubr.msk.bf16.vlgmr.msra.gmra.mrb[8].mxu0 %vm2538_vm14, %v6801_v31  ;;  %v4178_v31 = vmul.bf16 %v6325_v17, %v6831_v22  ;;  %v4177_v17 = vsel %vm6311_vm8, %v6846_v2, 0  ;;  %v4557_v22 = vld [vmem:[%s7088_s17] ss:$0 sm:$0xff] }
 0x616   : > { %5273 = vmatpush3.bf16.msra.mxu0 %v5614_v53  ;;  %5268 = vmatprep.mubr.msk.bf16.mxu0 %vm2538_vm14, %v6821_v5  ;;  %v4179_v5 = vmul.bf16 %v6345_v40, %v6836_v63  ;;  %v4181_v26 = vmul.bf16 %v6380_v41, %v4177_v17  ;;  %v4564_v40 = vld [vmem:[%s7086_s15] ss:$0 sm:$0xff] }
 0x617   : > { %5274 = vmatprep.subr.bf16.mxu0 %v5615_v25  ;;  %v5364_v44 = vadd.f32 %v4564_v40, %v4557_v22 }
 0x61a   : > { %5275 = vmatpush3.bf16.msra.mxu0 %v5615_v25 }
 0x61b   : > { %5276 = vmatprep.subr.bf16.mxu0 %v5616_v58 }
 0x61d   : > { %5269 = vmatmul.mubr.msk.bf16.gmra.mrb[12].mxu0 %vm2538_vm14, %v4067_v1 }
 0x61e   : > { %5277 = vmatpush3.bf16.msra.mxu0 %v5616_v58  ;;  %5280 = vmatprep.mubr.msk.bf16.mxu0 %vm2538_vm14, %v4178_v31 }
 0x61f   : > { %5278 = vmatprep.subr.bf16.mxu0 %v5617_v46 }
 0x622   : > { %5279 = vmatpush3.bf16.msra.mxu0 %v5617_v46 }
 0x625   : > { %5281 = vmatmul.mubr.msk.bf16.vlgmr.msra.gmra.mrb[8].mxu0 %vm2538_vm14, %v4179_v5 }
 0x626   : > { %5284 = vmatprep.mubr.msk.bf16.mxu0 %vm2538_vm14, %v4180_v43 }
 0x62d   : > { %5285 = vmatmul.mubr.msk.bf16.gmra.mrb[12].mxu0 %vm2538_vm14, %v4181_v26 }
 0x6f8   : > { %v5282_v63 = vpop.f32.mrb[8].mxu0 }
 0x6f9   : > { %v5363_v35 = vadd.f32 %v5364_v44, %v5282_v63  ;;  %v4261_v10 = vpop.f32.mrb[9].mxu0 }
 0x6fa   : > { %v5365_v38 = vadd.f32 %v5364_v44, %v4261_v10  ;;  %v5283_v41 = vpop.f32.mrb[10].mxu0 }
 0x6fb   : > { %v4717_v2 = vpack.c.bf16 %v5363_v35, %v5363_v35  ;;  %v5367_v0 = vadd.f32 %v5364_v44, %v5283_v41  ;;  %v4264_v27 = vpop.f32.mrb[11].mxu0 }
 0x6fc   : > { %v4715_v20 = vpack.c.bf16 %v5365_v38, %v5365_v38  ;;  %v5369_v7 = vadd.f32 %v5364_v44, %v4264_v27 }
 0x6fd   : > { %4335 = vst.msk [vmem:[%s633_s30 + $0x8] sm:$0xf] %vm4332_vm15, %v4717_v2  ;;  %v4718_v19 = vpack.c.bf16 %v5367_v0, %v5367_v0 }
 0x6fe   : > { %4333 = vst.msk [vmem:[%s633_s30] sm:$0xf] %vm4332_vm15, %v4715_v20  ;;  %v4716_v61 = vpack.c.bf16 %v5369_v7, %v5369_v7 }
 0x6ff   : > { %4336 = vst.msk [vmem:[%s633_s30 + $0xc] sm:$0xf] %vm4332_vm15, %v4718_v19 }
 0x700   : > { %4334 = vst.msk [vmem:[%s633_s30 + $0x4] sm:$0xf] %vm4332_vm15, %v4716_v61  ;;  %v5286_v6 = vpop.f32.mrb[12].mxu0 }
 0x701   : > { %v5371_v3 = vadd.f32 %v5364_v44, %v5286_v6  ;;  %v4277_v54 = vpop.f32.mrb[13].mxu0 }
 0x702   : > { %v5373_v28 = vadd.f32 %v5364_v44, %v4277_v54  ;;  %v5287_v23 = vpop.f32.mrb[14].mxu0 }
 0x703   : > { %v4721_v16 = vpack.c.bf16 %v5371_v3, %v5371_v3  ;;  %v5375_v34 = vadd.f32 %v5364_v44, %v5287_v23  ;;  %v4280_v47 = vpop.f32.mrb[15].mxu0 }
 0x704   : > { %v4719_v21 = vpack.c.bf16 %v5373_v28, %v5373_v28  ;;  %v5377_v45 = vadd.f32 %v5364_v44, %v4280_v47 }
 0x705   : > { %4339 = vst.msk [vmem:[%s633_s30 + $0x18] sm:$0xf] %vm4332_vm15, %v4721_v16  ;;  %v4722_v55 = vpack.c.bf16 %v5375_v34, %v5375_v34 }
 0x706   : > { %4337 = vst.msk [vmem:[%s633_s30 + $0x10] sm:$0xf] %vm4332_vm15, %v4719_v21  ;;  %v4720_v52 = vpack.c.bf16 %v5377_v45, %v5377_v45 }
 0x707   : > { %4340 = vst.msk [vmem:[%s633_s30 + $0x1c] sm:$0xf] %vm4332_vm15, %v4722_v55 }
 0x708   : > { %4338 = vst.msk [vmem:[%s633_s30 + $0x14] sm:$0xf] %vm4332_vm15, %v4720_v52 }
 0x709   : > { %5711 = shalt.err (!%p5708_p3)
}
 0x70a   : > { %s5712_s27 = scalar_lea.hbm %s7021_s3, 512  ;;  %s5716_s25 = scalar_lea.hbm %s7091_s20, 1024 }
 0x70b   : > { %p5713_p4 = scmp.ne.s32.totalorder %s7021_s3, %s5712_s27  ;;  %p5717_p9 = scmp.lt.u32.totalorder %s7021_s3, %s7091_s20 }
 0x70c   : > { %p5718_p10 = scmp.lt.u32.totalorder %s5716_s25, %s5712_s27  ;;  %p5720_p12 = scmp.lt.u32.totalorder %s5712_s27, %s7021_s3 }
 0x70d   : > { %p5714_p7 = pnand %p5713_p4, %p5913_p5 }
 0x70e   : > { %p5719_p11 = por %p5718_p10, %p5717_p9 }
 0x70f   : > { %p5715_p8 = pneg %p5714_p7 }
 0x710   : > { %p5721_p13 = por %p5720_p12, %p5719_p11 }
 0x712   : > { %p5722_p0 = pnand %p5721_p13, %p5715_p8 }
 0x714   : > { %5725 = shalt.err (!%p5722_p0)
}
 0x715   : > { %s5768_s23 = smov 64   ;;  %s5769_s8 = smov 4  }
 0x716   : > { %5514 = dma.vmem_to_hbm [thread:$0]  (%p5913_p5), %s7023_s0, 512, %s7021_s3, %s7030_s2, %s5768_s23, %s5768_s23, %s5769_s8  }
 0x717 PF: > { %p5520_p1 = scmp.ge.s32.totalorder %s5760_s24, 2  ;;  %s4370_s21 = sand.u32 1, %s5748_s1  }
 0x718   : > { %s4371_s27 = scalar_lea.sflag [#allocation3], %s4370_s21 }
 0x719   : > { %p5517_p2 = pnand %p5520_p1, %p5917_p6 }
 0x71b   : > { %5743 = dma.done.wait (!%p5517_p2), %s4371_s27, 512  }
 0x71c   : > { %5745 = vsyncadd (!%p5517_p2), %s4371_s27, 4294966784  ;;  %s7124_s24 = sld [smem:[#allocation6_spill]]  ;;  %s7125_s30 = sld [smem:[#allocation5_spill]] }
 0x71d   : > { %s7126_s23 = sld [smem:[#allocation7_spill]]  ;;  %s7127_s1 = smov %s5752_s22 }
 0x722   : > { %p30_p3 = scmp.ge.s32.totalorder %s7124_s24, 4   ;;  %s7128_s22 = smov %s7125_s30 }
 0x724   :  { %32 = sbr.rel (!%p30_p3) target bundleno = 11 (0xb), region = 154 }
 0x72b   :  { %4376 = vsyncpa [#allocation3], 1 }
 0x72c   :  { %4378 = vsyncpa [#allocation3 + $0x1], 1 }

</bundles_post_ra>
